<compile_context>
chip_gen: v6e
topology: v6e:2x2x1
jax: 0.10.0
libtpu: 0.0.40
codegen_flags: <defaults>
</compile_context>

<pallas_src>
import functools

import jax
import jax.numpy as jnp
from jax.experimental import pallas as pl
from jax.experimental.pallas import tpu as pltpu


# ----------------------------------------------------------------------------
# Fused kernel.
#   enc_x_ref : (S_enc, Bp, E)   time-major encoder embeddings (batch padded)
#   dec_x_ref : (S_dec, Bp, E)   time-major decoder embeddings
#   wih_*_ref : (E, 4H)          fused input->gate weights, gate order [i|f|g|o]
#   whh_*_ref : (H, 4H)          fused hidden->gate weights
#   b_*_ref   : (1, 4H)          fused bias (b_ih + b_hh)
#   lin_w_ref : (H, Vp)          vocab projection (pre-transposed, lane-padded)
#   lin_b_ref : (1, Vp)
#   out_ref   : (S_dec*Bp, Vp)   raw scores, time-major rows (t*Bp + b)
# ----------------------------------------------------------------------------
def summary_fused_kernel(enc_x_ref, dec_x_ref,
                         wih_e_ref, whh_e_ref, b_e_ref,
                         wih_d_ref, whh_d_ref, b_d_ref,
                         lin_w_ref, lin_b_ref,
                         out_ref):
    S_enc, Bp, E = enc_x_ref.shape
    S_dec = dec_x_ref.shape[0]
    H = whh_e_ref.shape[0]

    def run_layer(x_ref, wih_ref, whh_ref, b_ref, h0, c0, collect_outputs):
        S = x_ref.shape[0]
        # Hoisted input projection: one big matmul for all timesteps, bias folded in.
        x_flat = x_ref[...].reshape(S * Bp, E)
        xw = (jnp.dot(x_flat, wih_ref[...], preferred_element_type=jnp.float32)
              + b_ref[...])                                   # (S*Bp, 4H)
        xw = xw.reshape(S, Bp, 4 * H)

        whh = whh_ref[...]                                    # resident (H, 4H)
        h, c = h0, c0
        hs = []
        for t in range(S):                                    # static unroll
            gates = xw[t] + jnp.dot(h, whh,
                                    preferred_element_type=jnp.float32)  # (Bp, 4H)
            i_g = jax.nn.sigmoid(gates[:, 0 * H:1 * H])
            f_g = jax.nn.sigmoid(gates[:, 1 * H:2 * H])
            g_g = jnp.tanh(gates[:, 2 * H:3 * H])
            o_g = jax.nn.sigmoid(gates[:, 3 * H:4 * H])
            c = f_g * c + i_g * g_g
            h = o_g * jnp.tanh(c)
            if collect_outputs:
                hs.append(h)
        return h, c, hs

    zeros = jnp.zeros((Bp, H), jnp.float32)

    # Encoder: only final (hn, cn) are needed; output sequence is never stored.
    hn, cn, _ = run_layer(enc_x_ref, wih_e_ref, whh_e_ref, b_e_ref,
                          zeros, zeros, collect_outputs=False)

    # Decoder: collect all hidden states.
    _, _, dec_hs = run_layer(dec_x_ref, wih_d_ref, whh_d_ref, b_d_ref,
                             hn, cn, collect_outputs=True)

    dec_h = jnp.concatenate(dec_hs, axis=0)                   # (S_dec*Bp, H)

    # Fused vocab projection (single wide matmul, lane-dense Vp=128 output).
    out_ref[...] = (jnp.dot(dec_h, lin_w_ref[...],
                            preferred_element_type=jnp.float32)
                    + lin_b_ref[...])


# ----------------------------------------------------------------------------
# Parameter construction (deterministic, synthetic), in fused/padded layout.
# ----------------------------------------------------------------------------
def _fuse_lstm_params(key, input_dim, hidden_dim):
    k1, k2, k3, k4 = jax.random.split(key, 4)
    scale = 0.1
    # Conceptually PyTorch weight_ih (4H, E): generated per gate [i, f, g, o],
    # then fused & pre-transposed to (E, 4H) with gate blocks along lanes.
    wih_g = scale * jax.random.normal(k1, (4, input_dim, hidden_dim), jnp.float32)
    whh_g = scale * jax.random.normal(k2, (4, hidden_dim, hidden_dim), jnp.float32)
    b_ih = scale * jax.random.normal(k3, (4, hidden_dim), jnp.float32)
    b_hh = scale * jax.random.normal(k4, (4, hidden_dim), jnp.float32)
    wih = jnp.transpose(wih_g, (1, 0, 2)).reshape(input_dim, 4 * hidden_dim)
    whh = jnp.transpose(whh_g, (1, 0, 2)).reshape(hidden_dim, 4 * hidden_dim)
    b = (b_ih + b_hh).reshape(1, 4 * hidden_dim)
    return wih, whh, b


def make_params(key, vocab_size, embed_dim, hidden_dim, vocab_padded):
    ke, kenc, kdec, kl1, kl2 = jax.random.split(key, 5)
    lin_w_t = 0.1 * jax.random.normal(kl1, (hidden_dim, vocab_size), jnp.float32)
    lin_b = 0.1 * jax.random.normal(kl2, (1, vocab_size), jnp.float32)
    pad_v = vocab_padded - vocab_size
    return {
        "embedding": 0.1 * jax.random.normal(ke, (vocab_size, embed_dim), jnp.float32),
        "enc_lstm": _fuse_lstm_params(kenc, embed_dim, hidden_dim),
        "dec_lstm": _fuse_lstm_params(kdec, embed_dim, hidden_dim),
        # Pre-transposed (H, Vp) / (1, Vp); zero-padded lanes sliced off after kernel.
        "lin_w_t": jnp.pad(lin_w_t, ((0, 0), (0, pad_v))),
        "lin_b": jnp.pad(lin_b, ((0, 0), (0, pad_v))),
    }


# ----------------------------------------------------------------------------
# Forward pass. `vocab_size` is STATIC so the de-padding slice is static.
# ----------------------------------------------------------------------------
@functools.partial(jax.jit, static_argnames=("vocab_size",))
def summary_model_forward(params, enc_input_ids, dec_input_ids, *, vocab_size):
    B, S_enc = enc_input_ids.shape
    S_dec = dec_input_ids.shape[1]
    emb = params["embedding"]
    wih_e, whh_e, b_e = params["enc_lstm"]
    wih_d, whh_d, b_d = params["dec_lstm"]
    Vp = params["lin_w_t"].shape[1]

    Bp = max(8, ((B + 7) // 8) * 8)  # pad batch to the f32 sublane minimum
    pad_b = Bp - B

    def embed_time_major(ids):
        x = jnp.take(emb, ids, axis=0)                # (B, S, E)
        x = jnp.transpose(x, (1, 0, 2))               # (S, B, E) time-major
        if pad_b:
            x = jnp.pad(x, ((0, 0), (0, pad_b), (0, 0)))
        return x

    enc_x = embed_time_major(enc_input_ids)           # (S_enc, Bp, E)
    dec_x = embed_time_major(dec_input_ids)           # (S_dec, Bp, E)

    vmem = pl.BlockSpec(memory_space=pltpu.MemorySpace.VMEM)
    raw = pl.pallas_call(
        summary_fused_kernel,
        out_shape=jax.ShapeDtypeStruct((S_dec * Bp, Vp), jnp.float32),
        in_specs=[vmem] * 10,
        out_specs=vmem,
    )(enc_x, dec_x, wih_e, whh_e, b_e, wih_d, whh_d, b_d,
      params["lin_w_t"], params["lin_b"])

    # Drop batch/vocab padding; all slice bounds are static Python ints.
    raw = raw.reshape(S_dec, Bp, Vp)[:, :B, :vocab_size]
    return jnp.transpose(raw, (1, 0, 2))              # (B, S_dec, V)


# ----------------------------------------------------------------------------
# Pure-JAX reference (same fused param layout) for a correctness check.
# ----------------------------------------------------------------------------
def _reference_forward(params, enc_ids, dec_ids, vocab_size):
    hi = jax.lax.Precision.HIGHEST
    emb = params["embedding"]
    H = params["enc_lstm"][1].shape[0]
    V = vocab_size

    def lstm(x_bse, h0, c0, wih, whh, b, collect):
        h, c = h0, c0
        outs = []
        for t in range(x_bse.shape[1]):
            x_t = x_bse[:, t, :]
            gates = (jnp.dot(x_t, wih, precision=hi)
                     + jnp.dot(h, whh, precision=hi) + b)
            i_g = jax.nn.sigmoid(gates[:, 0 * H:1 * H])
            f_g = jax.nn.sigmoid(gates[:, 1 * H:2 * H])
            g_g = jnp.tanh(gates[:, 2 * H:3 * H])
            o_g = jax.nn.sigmoid(gates[:, 3 * H:4 * H])
            c = f_g * c + i_g * g_g
            h = o_g * jnp.tanh(c)
            if collect:
                outs.append(h)
        return h, c, (jnp.stack(outs, axis=1) if collect else None)

    enc_emb = jnp.take(emb, enc_ids, axis=0)
    dec_emb = jnp.take(emb, dec_ids, axis=0)
    z = jnp.zeros((enc_ids.shape[0], H), jnp.float32)
    wih_e, whh_e, b_e = params["enc_lstm"]
    wih_d, whh_d, b_d = params["dec_lstm"]
    hn, cn, _ = lstm(enc_emb, z, z, wih_e, whh_e, b_e, False)
    _, _, outs = lstm(dec_emb, hn, cn, wih_d, whh_d, b_d, True)   # (B, S_dec, H)
    raw = (jnp.einsum("bsh,hv->bsv", outs, params["lin_w_t"][:, :V], precision=hi)
           + params["lin_b"][:, :V])
    return raw


if __name__ == "__main__":
    # Small, forward-consistent sizes: batch=2, seq=8, embed=32, hidden=32, vocab=64.
    B, S_ENC, S_DEC = 2, 8, 8
    EMBED_DIM, HIDDEN_DIM, VOCAB = 32, 32, 64
    VOCAB_PADDED = 128  # lane-dense Linear output

    key = jax.random.PRNGKey(0)
    k_params, k_enc, k_dec = jax.random.split(key, 3)

    params = make_params(k_params, VOCAB, EMBED_DIM, HIDDEN_DIM, VOCAB_PADDED)
    enc_ids = jax.random.randint(k_enc, (B, S_ENC), 0, VOCAB, dtype=jnp.int32)
    dec_ids = jax.random.randint(k_dec, (B, S_DEC), 0, VOCAB, dtype=jnp.int32)

    raw_scores = summary_model_forward(params, enc_ids, dec_ids, vocab_size=VOCAB)
    jax.block_until_ready(raw_scores)

    assert raw_scores.shape == (B, S_DEC, VOCAB)
    assert bool(jnp.all(jnp.isfinite(raw_scores)))

    ref = _reference_forward(params, enc_ids, dec_ids, VOCAB)
    assert bool(jnp.allclose(raw_scores, ref, rtol=2e-3, atol=2e-3)), (
        float(jnp.max(jnp.abs(raw_scores - ref))))

    print("KERNEL_OK")
</pallas_src>

<mosaic_0001>
module attributes {stable_mosaic.version = 11 : i64} {
  func.func @summary_fused_kernel(%arg0: memref<8x8x32xf32, #tpu.memory_space<vmem>>, %arg1: memref<8x8x32xf32, #tpu.memory_space<vmem>>, %arg2: memref<32x128xf32, #tpu.memory_space<vmem>>, %arg3: memref<32x128xf32, #tpu.memory_space<vmem>>, %arg4: memref<1x128xf32, #tpu.memory_space<vmem>>, %arg5: memref<32x128xf32, #tpu.memory_space<vmem>>, %arg6: memref<32x128xf32, #tpu.memory_space<vmem>>, %arg7: memref<1x128xf32, #tpu.memory_space<vmem>>, %arg8: memref<32x128xf32, #tpu.memory_space<vmem>>, %arg9: memref<1x128xf32, #tpu.memory_space<vmem>>, %arg10: memref<64x128xf32, #tpu.memory_space<vmem>>) attributes {dimension_semantics = [], scalar_prefetch = 0 : i64, scratch_operands = 0 : i64, tpu.core_type = #tpu.core_type<tc>} {
    %cst = arith.constant 0.000000e+00 : f32
    %0 = vector.broadcast %cst : f32 to vector<8x32xf32>
    %c0 = arith.constant 0 : index
    %c0_0 = arith.constant 0 : index
    %c0_1 = arith.constant 0 : index
    %1 = vector.load %arg0[%c0, %c0_0, %c0_1] : memref<8x8x32xf32, #tpu.memory_space<vmem>>, vector<8x8x32xf32>
    %2 = vector.shape_cast %1 : vector<8x8x32xf32> to vector<64x32xf32>
    %c0_2 = arith.constant 0 : index
    %c0_3 = arith.constant 0 : index
    %3 = vector.load %arg2[%c0_2, %c0_3] : memref<32x128xf32, #tpu.memory_space<vmem>>, vector<32x128xf32>
    %cst_4 = arith.constant dense<0.000000e+00> : vector<64x128xf32>
    %4 = tpu.matmul %2, %3, %cst_4 {dimension_numbers = #tpu.dot_dimension_numbers<[1], [0], [0], [1], [0, 0, 1, 1], [], []>} : vector<64x32xf32>, vector<32x128xf32>, vector<64x128xf32> -> vector<64x128xf32>
    %c0_5 = arith.constant 0 : index
    %c0_6 = arith.constant 0 : index
    %5 = vector.load %arg4[%c0_5, %c0_6] : memref<1x128xf32, #tpu.memory_space<vmem>>, vector<1x128xf32>
    %6 = vector.broadcast %5 : vector<1x128xf32> to vector<64x128xf32>
    %7 = arith.addf %4, %6 : vector<64x128xf32>
    %8 = vector.shape_cast %7 : vector<64x128xf32> to vector<8x8x128xf32>
    %c0_7 = arith.constant 0 : index
    %c0_8 = arith.constant 0 : index
    %9 = vector.load %arg3[%c0_7, %c0_8] : memref<32x128xf32, #tpu.memory_space<vmem>>, vector<32x128xf32>
    %10 = vector.extract_strided_slice %8 {offsets = [0, 0, 0], sizes = [1, 8, 128], strides = [1, 1, 1]} : vector<8x8x128xf32> to vector<1x8x128xf32>
    %11 = vector.shape_cast %10 : vector<1x8x128xf32> to vector<8x128xf32>
    %cst_9 = arith.constant dense<0.000000e+00> : vector<8x128xf32>
    %12 = tpu.matmul %0, %9, %cst_9 {dimension_numbers = #tpu.dot_dimension_numbers<[1], [0], [0], [1], [0, 0, 1, 1], [], []>} : vector<8x32xf32>, vector<32x128xf32>, vector<8x128xf32> -> vector<8x128xf32>
    %13 = arith.addf %11, %12 : vector<8x128xf32>
    %14 = vector.extract_strided_slice %13 {offsets = [0, 0], sizes = [8, 32], strides = [1, 1]} : vector<8x128xf32> to vector<8x32xf32>
    %15 = arith.negf %14 : vector<8x32xf32>
    %16 = math.exp %15 : vector<8x32xf32>
    %cst_10 = arith.constant 1.000000e+00 : f32
    %17 = vector.broadcast %cst_10 : f32 to vector<8x32xf32>
    %18 = arith.addf %17, %16 : vector<8x32xf32>
    %19 = arith.divf %17, %18 : vector<8x32xf32>
    %20 = vector.extract_strided_slice %13 {offsets = [0, 32], sizes = [8, 32], strides = [1, 1]} : vector<8x128xf32> to vector<8x32xf32>
    %21 = arith.negf %20 : vector<8x32xf32>
    %22 = math.exp %21 : vector<8x32xf32>
    %cst_11 = arith.constant 1.000000e+00 : f32
    %23 = vector.broadcast %cst_11 : f32 to vector<8x32xf32>
    %24 = arith.addf %23, %22 : vector<8x32xf32>
    %25 = arith.divf %23, %24 : vector<8x32xf32>
    %26 = vector.extract_strided_slice %13 {offsets = [0, 64], sizes = [8, 32], strides = [1, 1]} : vector<8x128xf32> to vector<8x32xf32>
    %27 = math.tanh %26 : vector<8x32xf32>
    %28 = vector.extract_strided_slice %13 {offsets = [0, 96], sizes = [8, 32], strides = [1, 1]} : vector<8x128xf32> to vector<8x32xf32>
    %29 = arith.negf %28 : vector<8x32xf32>
    %30 = math.exp %29 : vector<8x32xf32>
    %cst_12 = arith.constant 1.000000e+00 : f32
    %31 = vector.broadcast %cst_12 : f32 to vector<8x32xf32>
    %32 = arith.addf %31, %30 : vector<8x32xf32>
    %33 = arith.divf %31, %32 : vector<8x32xf32>
    %34 = arith.mulf %25, %0 : vector<8x32xf32>
    %35 = arith.mulf %19, %27 : vector<8x32xf32>
    %36 = arith.addf %34, %35 : vector<8x32xf32>
    %37 = math.tanh %36 : vector<8x32xf32>
    %38 = arith.mulf %33, %37 : vector<8x32xf32>
    %39 = vector.extract_strided_slice %8 {offsets = [1, 0, 0], sizes = [1, 8, 128], strides = [1, 1, 1]} : vector<8x8x128xf32> to vector<1x8x128xf32>
    %40 = vector.shape_cast %39 : vector<1x8x128xf32> to vector<8x128xf32>
    %cst_13 = arith.constant dense<0.000000e+00> : vector<8x128xf32>
    %41 = tpu.matmul %38, %9, %cst_13 {dimension_numbers = #tpu.dot_dimension_numbers<[1], [0], [0], [1], [0, 0, 1, 1], [], []>} : vector<8x32xf32>, vector<32x128xf32>, vector<8x128xf32> -> vector<8x128xf32>
    %42 = arith.addf %40, %41 : vector<8x128xf32>
    %43 = vector.extract_strided_slice %42 {offsets = [0, 0], sizes = [8, 32], strides = [1, 1]} : vector<8x128xf32> to vector<8x32xf32>
    %44 = arith.negf %43 : vector<8x32xf32>
    %45 = math.exp %44 : vector<8x32xf32>
    %cst_14 = arith.constant 1.000000e+00 : f32
    %46 = vector.broadcast %cst_14 : f32 to vector<8x32xf32>
    %47 = arith.addf %46, %45 : vector<8x32xf32>
    %48 = arith.divf %46, %47 : vector<8x32xf32>
    %49 = vector.extract_strided_slice %42 {offsets = [0, 32], sizes = [8, 32], strides = [1, 1]} : vector<8x128xf32> to vector<8x32xf32>
    %50 = arith.negf %49 : vector<8x32xf32>
    %51 = math.exp %50 : vector<8x32xf32>
    %cst_15 = arith.constant 1.000000e+00 : f32
    %52 = vector.broadcast %cst_15 : f32 to vector<8x32xf32>
    %53 = arith.addf %52, %51 : vector<8x32xf32>
    %54 = arith.divf %52, %53 : vector<8x32xf32>
    %55 = vector.extract_strided_slice %42 {offsets = [0, 64], sizes = [8, 32], strides = [1, 1]} : vector<8x128xf32> to vector<8x32xf32>
    %56 = math.tanh %55 : vector<8x32xf32>
    %57 = vector.extract_strided_slice %42 {offsets = [0, 96], sizes = [8, 32], strides = [1, 1]} : vector<8x128xf32> to vector<8x32xf32>
    %58 = arith.negf %57 : vector<8x32xf32>
    %59 = math.exp %58 : vector<8x32xf32>
    %cst_16 = arith.constant 1.000000e+00 : f32
    %60 = vector.broadcast %cst_16 : f32 to vector<8x32xf32>
    %61 = arith.addf %60, %59 : vector<8x32xf32>
    %62 = arith.divf %60, %61 : vector<8x32xf32>
    %63 = arith.mulf %54, %36 : vector<8x32xf32>
    %64 = arith.mulf %48, %56 : vector<8x32xf32>
    %65 = arith.addf %63, %64 : vector<8x32xf32>
    %66 = math.tanh %65 : vector<8x32xf32>
    %67 = arith.mulf %62, %66 : vector<8x32xf32>
    %68 = vector.extract_strided_slice %8 {offsets = [2, 0, 0], sizes = [1, 8, 128], strides = [1, 1, 1]} : vector<8x8x128xf32> to vector<1x8x128xf32>
    %69 = vector.shape_cast %68 : vector<1x8x128xf32> to vector<8x128xf32>
    %cst_17 = arith.constant dense<0.000000e+00> : vector<8x128xf32>
    %70 = tpu.matmul %67, %9, %cst_17 {dimension_numbers = #tpu.dot_dimension_numbers<[1], [0], [0], [1], [0, 0, 1, 1], [], []>} : vector<8x32xf32>, vector<32x128xf32>, vector<8x128xf32> -> vector<8x128xf32>
    %71 = arith.addf %69, %70 : vector<8x128xf32>
    %72 = vector.extract_strided_slice %71 {offsets = [0, 0], sizes = [8, 32], strides = [1, 1]} : vector<8x128xf32> to vector<8x32xf32>
    %73 = arith.negf %72 : vector<8x32xf32>
    %74 = math.exp %73 : vector<8x32xf32>
    %cst_18 = arith.constant 1.000000e+00 : f32
    %75 = vector.broadcast %cst_18 : f32 to vector<8x32xf32>
    %76 = arith.addf %75, %74 : vector<8x32xf32>
    %77 = arith.divf %75, %76 : vector<8x32xf32>
    %78 = vector.extract_strided_slice %71 {offsets = [0, 32], sizes = [8, 32], strides = [1, 1]} : vector<8x128xf32> to vector<8x32xf32>
    %79 = arith.negf %78 : vector<8x32xf32>
    %80 = math.exp %79 : vector<8x32xf32>
    %cst_19 = arith.constant 1.000000e+00 : f32
    %81 = vector.broadcast %cst_19 : f32 to vector<8x32xf32>
    %82 = arith.addf %81, %80 : vector<8x32xf32>
    %83 = arith.divf %81, %82 : vector<8x32xf32>
    %84 = vector.extract_strided_slice %71 {offsets = [0, 64], sizes = [8, 32], strides = [1, 1]} : vector<8x128xf32> to vector<8x32xf32>
    %85 = math.tanh %84 : vector<8x32xf32>
    %86 = vector.extract_strided_slice %71 {offsets = [0, 96], sizes = [8, 32], strides = [1, 1]} : vector<8x128xf32> to vector<8x32xf32>
    %87 = arith.negf %86 : vector<8x32xf32>
    %88 = math.exp %87 : vector<8x32xf32>
    %cst_20 = arith.constant 1.000000e+00 : f32
    %89 = vector.broadcast %cst_20 : f32 to vector<8x32xf32>
    %90 = arith.addf %89, %88 : vector<8x32xf32>
    %91 = arith.divf %89, %90 : vector<8x32xf32>
    %92 = arith.mulf %83, %65 : vector<8x32xf32>
    %93 = arith.mulf %77, %85 : vector<8x32xf32>
    %94 = arith.addf %92, %93 : vector<8x32xf32>
    %95 = math.tanh %94 : vector<8x32xf32>
    %96 = arith.mulf %91, %95 : vector<8x32xf32>
    %97 = vector.extract_strided_slice %8 {offsets = [3, 0, 0], sizes = [1, 8, 128], strides = [1, 1, 1]} : vector<8x8x128xf32> to vector<1x8x128xf32>
    %98 = vector.shape_cast %97 : vector<1x8x128xf32> to vector<8x128xf32>
    %cst_21 = arith.constant dense<0.000000e+00> : vector<8x128xf32>
    %99 = tpu.matmul %96, %9, %cst_21 {dimension_numbers = #tpu.dot_dimension_numbers<[1], [0], [0], [1], [0, 0, 1, 1], [], []>} : vector<8x32xf32>, vector<32x128xf32>, vector<8x128xf32> -> vector<8x128xf32>
    %100 = arith.addf %98, %99 : vector<8x128xf32>
    %101 = vector.extract_strided_slice %100 {offsets = [0, 0], sizes = [8, 32], strides = [1, 1]} : vector<8x128xf32> to vector<8x32xf32>
    %102 = arith.negf %101 : vector<8x32xf32>
    %103 = math.exp %102 : vector<8x32xf32>
    %cst_22 = arith.constant 1.000000e+00 : f32
    %104 = vector.broadcast %cst_22 : f32 to vector<8x32xf32>
    %105 = arith.addf %104, %103 : vector<8x32xf32>
    %106 = arith.divf %104, %105 : vector<8x32xf32>
    %107 = vector.extract_strided_slice %100 {offsets = [0, 32], sizes = [8, 32], strides = [1, 1]} : vector<8x128xf32> to vector<8x32xf32>
    %108 = arith.negf %107 : vector<8x32xf32>
    %109 = math.exp %108 : vector<8x32xf32>
    %cst_23 = arith.constant 1.000000e+00 : f32
    %110 = vector.broadcast %cst_23 : f32 to vector<8x32xf32>
    %111 = arith.addf %110, %109 : vector<8x32xf32>
    %112 = arith.divf %110, %111 : vector<8x32xf32>
    %113 = vector.extract_strided_slice %100 {offsets = [0, 64], sizes = [8, 32], strides = [1, 1]} : vector<8x128xf32> to vector<8x32xf32>
    %114 = math.tanh %113 : vector<8x32xf32>
    %115 = vector.extract_strided_slice %100 {offsets = [0, 96], sizes = [8, 32], strides = [1, 1]} : vector<8x128xf32> to vector<8x32xf32>
    %116 = arith.negf %115 : vector<8x32xf32>
    %117 = math.exp %116 : vector<8x32xf32>
    %cst_24 = arith.constant 1.000000e+00 : f32
    %118 = vector.broadcast %cst_24 : f32 to vector<8x32xf32>
    %119 = arith.addf %118, %117 : vector<8x32xf32>
    %120 = arith.divf %118, %119 : vector<8x32xf32>
    %121 = arith.mulf %112, %94 : vector<8x32xf32>
    %122 = arith.mulf %106, %114 : vector<8x32xf32>
    %123 = arith.addf %121, %122 : vector<8x32xf32>
    %124 = math.tanh %123 : vector<8x32xf32>
    %125 = arith.mulf %120, %124 : vector<8x32xf32>
    %126 = vector.extract_strided_slice %8 {offsets = [4, 0, 0], sizes = [1, 8, 128], strides = [1, 1, 1]} : vector<8x8x128xf32> to vector<1x8x128xf32>
    %127 = vector.shape_cast %126 : vector<1x8x128xf32> to vector<8x128xf32>
    %cst_25 = arith.constant dense<0.000000e+00> : vector<8x128xf32>
    %128 = tpu.matmul %125, %9, %cst_25 {dimension_numbers = #tpu.dot_dimension_numbers<[1], [0], [0], [1], [0, 0, 1, 1], [], []>} : vector<8x32xf32>, vector<32x128xf32>, vector<8x128xf32> -> vector<8x128xf32>
    %129 = arith.addf %127, %128 : vector<8x128xf32>
    %130 = vector.extract_strided_slice %129 {offsets = [0, 0], sizes = [8, 32], strides = [1, 1]} : vector<8x128xf32> to vector<8x32xf32>
    %131 = arith.negf %130 : vector<8x32xf32>
    %132 = math.exp %131 : vector<8x32xf32>
    %cst_26 = arith.constant 1.000000e+00 : f32
    %133 = vector.broadcast %cst_26 : f32 to vector<8x32xf32>
    %134 = arith.addf %133, %132 : vector<8x32xf32>
    %135 = arith.divf %133, %134 : vector<8x32xf32>
    %136 = vector.extract_strided_slice %129 {offsets = [0, 32], sizes = [8, 32], strides = [1, 1]} : vector<8x128xf32> to vector<8x32xf32>
    %137 = arith.negf %136 : vector<8x32xf32>
    %138 = math.exp %137 : vector<8x32xf32>
    %cst_27 = arith.constant 1.000000e+00 : f32
    %139 = vector.broadcast %cst_27 : f32 to vector<8x32xf32>
    %140 = arith.addf %139, %138 : vector<8x32xf32>
    %141 = arith.divf %139, %140 : vector<8x32xf32>
    %142 = vector.extract_strided_slice %129 {offsets = [0, 64], sizes = [8, 32], strides = [1, 1]} : vector<8x128xf32> to vector<8x32xf32>
    %143 = math.tanh %142 : vector<8x32xf32>
    %144 = vector.extract_strided_slice %129 {offsets = [0, 96], sizes = [8, 32], strides = [1, 1]} : vector<8x128xf32> to vector<8x32xf32>
    %145 = arith.negf %144 : vector<8x32xf32>
    %146 = math.exp %145 : vector<8x32xf32>
    %cst_28 = arith.constant 1.000000e+00 : f32
    %147 = vector.broadcast %cst_28 : f32 to vector<8x32xf32>
    %148 = arith.addf %147, %146 : vector<8x32xf32>
    %149 = arith.divf %147, %148 : vector<8x32xf32>
    %150 = arith.mulf %141, %123 : vector<8x32xf32>
    %151 = arith.mulf %135, %143 : vector<8x32xf32>
    %152 = arith.addf %150, %151 : vector<8x32xf32>
    %153 = math.tanh %152 : vector<8x32xf32>
    %154 = arith.mulf %149, %153 : vector<8x32xf32>
    %155 = vector.extract_strided_slice %8 {offsets = [5, 0, 0], sizes = [1, 8, 128], strides = [1, 1, 1]} : vector<8x8x128xf32> to vector<1x8x128xf32>
    %156 = vector.shape_cast %155 : vector<1x8x128xf32> to vector<8x128xf32>
    %cst_29 = arith.constant dense<0.000000e+00> : vector<8x128xf32>
    %157 = tpu.matmul %154, %9, %cst_29 {dimension_numbers = #tpu.dot_dimension_numbers<[1], [0], [0], [1], [0, 0, 1, 1], [], []>} : vector<8x32xf32>, vector<32x128xf32>, vector<8x128xf32> -> vector<8x128xf32>
    %158 = arith.addf %156, %157 : vector<8x128xf32>
    %159 = vector.extract_strided_slice %158 {offsets = [0, 0], sizes = [8, 32], strides = [1, 1]} : vector<8x128xf32> to vector<8x32xf32>
    %160 = arith.negf %159 : vector<8x32xf32>
    %161 = math.exp %160 : vector<8x32xf32>
    %cst_30 = arith.constant 1.000000e+00 : f32
    %162 = vector.broadcast %cst_30 : f32 to vector<8x32xf32>
    %163 = arith.addf %162, %161 : vector<8x32xf32>
    %164 = arith.divf %162, %163 : vector<8x32xf32>
    %165 = vector.extract_strided_slice %158 {offsets = [0, 32], sizes = [8, 32], strides = [1, 1]} : vector<8x128xf32> to vector<8x32xf32>
    %166 = arith.negf %165 : vector<8x32xf32>
    %167 = math.exp %166 : vector<8x32xf32>
    %cst_31 = arith.constant 1.000000e+00 : f32
    %168 = vector.broadcast %cst_31 : f32 to vector<8x32xf32>
    %169 = arith.addf %168, %167 : vector<8x32xf32>
    %170 = arith.divf %168, %169 : vector<8x32xf32>
    %171 = vector.extract_strided_slice %158 {offsets = [0, 64], sizes = [8, 32], strides = [1, 1]} : vector<8x128xf32> to vector<8x32xf32>
    %172 = math.tanh %171 : vector<8x32xf32>
    %173 = vector.extract_strided_slice %158 {offsets = [0, 96], sizes = [8, 32], strides = [1, 1]} : vector<8x128xf32> to vector<8x32xf32>
    %174 = arith.negf %173 : vector<8x32xf32>
    %175 = math.exp %174 : vector<8x32xf32>
    %cst_32 = arith.constant 1.000000e+00 : f32
    %176 = vector.broadcast %cst_32 : f32 to vector<8x32xf32>
    %177 = arith.addf %176, %175 : vector<8x32xf32>
    %178 = arith.divf %176, %177 : vector<8x32xf32>
    %179 = arith.mulf %170, %152 : vector<8x32xf32>
    %180 = arith.mulf %164, %172 : vector<8x32xf32>
    %181 = arith.addf %179, %180 : vector<8x32xf32>
    %182 = math.tanh %181 : vector<8x32xf32>
    %183 = arith.mulf %178, %182 : vector<8x32xf32>
    %184 = vector.extract_strided_slice %8 {offsets = [6, 0, 0], sizes = [1, 8, 128], strides = [1, 1, 1]} : vector<8x8x128xf32> to vector<1x8x128xf32>
    %185 = vector.shape_cast %184 : vector<1x8x128xf32> to vector<8x128xf32>
    %cst_33 = arith.constant dense<0.000000e+00> : vector<8x128xf32>
    %186 = tpu.matmul %183, %9, %cst_33 {dimension_numbers = #tpu.dot_dimension_numbers<[1], [0], [0], [1], [0, 0, 1, 1], [], []>} : vector<8x32xf32>, vector<32x128xf32>, vector<8x128xf32> -> vector<8x128xf32>
    %187 = arith.addf %185, %186 : vector<8x128xf32>
    %188 = vector.extract_strided_slice %187 {offsets = [0, 0], sizes = [8, 32], strides = [1, 1]} : vector<8x128xf32> to vector<8x32xf32>
    %189 = arith.negf %188 : vector<8x32xf32>
    %190 = math.exp %189 : vector<8x32xf32>
    %cst_34 = arith.constant 1.000000e+00 : f32
    %191 = vector.broadcast %cst_34 : f32 to vector<8x32xf32>
    %192 = arith.addf %191, %190 : vector<8x32xf32>
    %193 = arith.divf %191, %192 : vector<8x32xf32>
    %194 = vector.extract_strided_slice %187 {offsets = [0, 32], sizes = [8, 32], strides = [1, 1]} : vector<8x128xf32> to vector<8x32xf32>
    %195 = arith.negf %194 : vector<8x32xf32>
    %196 = math.exp %195 : vector<8x32xf32>
    %cst_35 = arith.constant 1.000000e+00 : f32
    %197 = vector.broadcast %cst_35 : f32 to vector<8x32xf32>
    %198 = arith.addf %197, %196 : vector<8x32xf32>
    %199 = arith.divf %197, %198 : vector<8x32xf32>
    %200 = vector.extract_strided_slice %187 {offsets = [0, 64], sizes = [8, 32], strides = [1, 1]} : vector<8x128xf32> to vector<8x32xf32>
    %201 = math.tanh %200 : vector<8x32xf32>
    %202 = vector.extract_strided_slice %187 {offsets = [0, 96], sizes = [8, 32], strides = [1, 1]} : vector<8x128xf32> to vector<8x32xf32>
    %203 = arith.negf %202 : vector<8x32xf32>
    %204 = math.exp %203 : vector<8x32xf32>
    %cst_36 = arith.constant 1.000000e+00 : f32
    %205 = vector.broadcast %cst_36 : f32 to vector<8x32xf32>
    %206 = arith.addf %205, %204 : vector<8x32xf32>
    %207 = arith.divf %205, %206 : vector<8x32xf32>
    %208 = arith.mulf %199, %181 : vector<8x32xf32>
    %209 = arith.mulf %193, %201 : vector<8x32xf32>
    %210 = arith.addf %208, %209 : vector<8x32xf32>
    %211 = math.tanh %210 : vector<8x32xf32>
    %212 = arith.mulf %207, %211 : vector<8x32xf32>
    %213 = vector.extract_strided_slice %8 {offsets = [7, 0, 0], sizes = [1, 8, 128], strides = [1, 1, 1]} : vector<8x8x128xf32> to vector<1x8x128xf32>
    %214 = vector.shape_cast %213 : vector<1x8x128xf32> to vector<8x128xf32>
    %cst_37 = arith.constant dense<0.000000e+00> : vector<8x128xf32>
    %215 = tpu.matmul %212, %9, %cst_37 {dimension_numbers = #tpu.dot_dimension_numbers<[1], [0], [0], [1], [0, 0, 1, 1], [], []>} : vector<8x32xf32>, vector<32x128xf32>, vector<8x128xf32> -> vector<8x128xf32>
    %216 = arith.addf %214, %215 : vector<8x128xf32>
    %217 = vector.extract_strided_slice %216 {offsets = [0, 0], sizes = [8, 32], strides = [1, 1]} : vector<8x128xf32> to vector<8x32xf32>
    %218 = arith.negf %217 : vector<8x32xf32>
    %219 = math.exp %218 : vector<8x32xf32>
    %cst_38 = arith.constant 1.000000e+00 : f32
    %220 = vector.broadcast %cst_38 : f32 to vector<8x32xf32>
    %221 = arith.addf %220, %219 : vector<8x32xf32>
    %222 = arith.divf %220, %221 : vector<8x32xf32>
    %223 = vector.extract_strided_slice %216 {offsets = [0, 32], sizes = [8, 32], strides = [1, 1]} : vector<8x128xf32> to vector<8x32xf32>
    %224 = arith.negf %223 : vector<8x32xf32>
    %225 = math.exp %224 : vector<8x32xf32>
    %cst_39 = arith.constant 1.000000e+00 : f32
    %226 = vector.broadcast %cst_39 : f32 to vector<8x32xf32>
    %227 = arith.addf %226, %225 : vector<8x32xf32>
    %228 = arith.divf %226, %227 : vector<8x32xf32>
    %229 = vector.extract_strided_slice %216 {offsets = [0, 64], sizes = [8, 32], strides = [1, 1]} : vector<8x128xf32> to vector<8x32xf32>
    %230 = math.tanh %229 : vector<8x32xf32>
    %231 = vector.extract_strided_slice %216 {offsets = [0, 96], sizes = [8, 32], strides = [1, 1]} : vector<8x128xf32> to vector<8x32xf32>
    %232 = arith.negf %231 : vector<8x32xf32>
    %233 = math.exp %232 : vector<8x32xf32>
    %cst_40 = arith.constant 1.000000e+00 : f32
    %234 = vector.broadcast %cst_40 : f32 to vector<8x32xf32>
    %235 = arith.addf %234, %233 : vector<8x32xf32>
    %236 = arith.divf %234, %235 : vector<8x32xf32>
    %237 = arith.mulf %228, %210 : vector<8x32xf32>
    %238 = arith.mulf %222, %230 : vector<8x32xf32>
    %239 = arith.addf %237, %238 : vector<8x32xf32>
    %240 = math.tanh %239 : vector<8x32xf32>
    %241 = arith.mulf %236, %240 : vector<8x32xf32>
    %c0_41 = arith.constant 0 : index
    %c0_42 = arith.constant 0 : index
    %c0_43 = arith.constant 0 : index
    %242 = vector.load %arg1[%c0_41, %c0_42, %c0_43] : memref<8x8x32xf32, #tpu.memory_space<vmem>>, vector<8x8x32xf32>
    %243 = vector.shape_cast %242 : vector<8x8x32xf32> to vector<64x32xf32>
    %c0_44 = arith.constant 0 : index
    %c0_45 = arith.constant 0 : index
    %244 = vector.load %arg5[%c0_44, %c0_45] : memref<32x128xf32, #tpu.memory_space<vmem>>, vector<32x128xf32>
    %cst_46 = arith.constant dense<0.000000e+00> : vector<64x128xf32>
    %245 = tpu.matmul %243, %244, %cst_46 {dimension_numbers = #tpu.dot_dimension_numbers<[1], [0], [0], [1], [0, 0, 1, 1], [], []>} : vector<64x32xf32>, vector<32x128xf32>, vector<64x128xf32> -> vector<64x128xf32>
    %c0_47 = arith.constant 0 : index
    %c0_48 = arith.constant 0 : index
    %246 = vector.load %arg7[%c0_47, %c0_48] : memref<1x128xf32, #tpu.memory_space<vmem>>, vector<1x128xf32>
    %247 = vector.broadcast %246 : vector<1x128xf32> to vector<64x128xf32>
    %248 = arith.addf %245, %247 : vector<64x128xf32>
    %249 = vector.shape_cast %248 : vector<64x128xf32> to vector<8x8x128xf32>
    %c0_49 = arith.constant 0 : index
    %c0_50 = arith.constant 0 : index
    %250 = vector.load %arg6[%c0_49, %c0_50] : memref<32x128xf32, #tpu.memory_space<vmem>>, vector<32x128xf32>
    %251 = vector.extract_strided_slice %249 {offsets = [0, 0, 0], sizes = [1, 8, 128], strides = [1, 1, 1]} : vector<8x8x128xf32> to vector<1x8x128xf32>
    %252 = vector.shape_cast %251 : vector<1x8x128xf32> to vector<8x128xf32>
    %cst_51 = arith.constant dense<0.000000e+00> : vector<8x128xf32>
    %253 = tpu.matmul %241, %250, %cst_51 {dimension_numbers = #tpu.dot_dimension_numbers<[1], [0], [0], [1], [0, 0, 1, 1], [], []>} : vector<8x32xf32>, vector<32x128xf32>, vector<8x128xf32> -> vector<8x128xf32>
    %254 = arith.addf %252, %253 : vector<8x128xf32>
    %255 = vector.extract_strided_slice %254 {offsets = [0, 0], sizes = [8, 32], strides = [1, 1]} : vector<8x128xf32> to vector<8x32xf32>
    %256 = arith.negf %255 : vector<8x32xf32>
    %257 = math.exp %256 : vector<8x32xf32>
    %cst_52 = arith.constant 1.000000e+00 : f32
    %258 = vector.broadcast %cst_52 : f32 to vector<8x32xf32>
    %259 = arith.addf %258, %257 : vector<8x32xf32>
    %260 = arith.divf %258, %259 : vector<8x32xf32>
    %261 = vector.extract_strided_slice %254 {offsets = [0, 32], sizes = [8, 32], strides = [1, 1]} : vector<8x128xf32> to vector<8x32xf32>
    %262 = arith.negf %261 : vector<8x32xf32>
    %263 = math.exp %262 : vector<8x32xf32>
    %cst_53 = arith.constant 1.000000e+00 : f32
    %264 = vector.broadcast %cst_53 : f32 to vector<8x32xf32>
    %265 = arith.addf %264, %263 : vector<8x32xf32>
    %266 = arith.divf %264, %265 : vector<8x32xf32>
    %267 = vector.extract_strided_slice %254 {offsets = [0, 64], sizes = [8, 32], strides = [1, 1]} : vector<8x128xf32> to vector<8x32xf32>
    %268 = math.tanh %267 : vector<8x32xf32>
    %269 = vector.extract_strided_slice %254 {offsets = [0, 96], sizes = [8, 32], strides = [1, 1]} : vector<8x128xf32> to vector<8x32xf32>
    %270 = arith.negf %269 : vector<8x32xf32>
    %271 = math.exp %270 : vector<8x32xf32>
    %cst_54 = arith.constant 1.000000e+00 : f32
    %272 = vector.broadcast %cst_54 : f32 to vector<8x32xf32>
    %273 = arith.addf %272, %271 : vector<8x32xf32>
    %274 = arith.divf %272, %273 : vector<8x32xf32>
    %275 = arith.mulf %266, %239 : vector<8x32xf32>
    %276 = arith.mulf %260, %268 : vector<8x32xf32>
    %277 = arith.addf %275, %276 : vector<8x32xf32>
    %278 = math.tanh %277 : vector<8x32xf32>
    %279 = arith.mulf %274, %278 : vector<8x32xf32>
    %280 = vector.extract_strided_slice %249 {offsets = [1, 0, 0], sizes = [1, 8, 128], strides = [1, 1, 1]} : vector<8x8x128xf32> to vector<1x8x128xf32>
    %281 = vector.shape_cast %280 : vector<1x8x128xf32> to vector<8x128xf32>
    %cst_55 = arith.constant dense<0.000000e+00> : vector<8x128xf32>
    %282 = tpu.matmul %279, %250, %cst_55 {dimension_numbers = #tpu.dot_dimension_numbers<[1], [0], [0], [1], [0, 0, 1, 1], [], []>} : vector<8x32xf32>, vector<32x128xf32>, vector<8x128xf32> -> vector<8x128xf32>
    %283 = arith.addf %281, %282 : vector<8x128xf32>
    %284 = vector.extract_strided_slice %283 {offsets = [0, 0], sizes = [8, 32], strides = [1, 1]} : vector<8x128xf32> to vector<8x32xf32>
    %285 = arith.negf %284 : vector<8x32xf32>
    %286 = math.exp %285 : vector<8x32xf32>
    %cst_56 = arith.constant 1.000000e+00 : f32
    %287 = vector.broadcast %cst_56 : f32 to vector<8x32xf32>
    %288 = arith.addf %287, %286 : vector<8x32xf32>
    %289 = arith.divf %287, %288 : vector<8x32xf32>
    %290 = vector.extract_strided_slice %283 {offsets = [0, 32], sizes = [8, 32], strides = [1, 1]} : vector<8x128xf32> to vector<8x32xf32>
    %291 = arith.negf %290 : vector<8x32xf32>
    %292 = math.exp %291 : vector<8x32xf32>
    %cst_57 = arith.constant 1.000000e+00 : f32
    %293 = vector.broadcast %cst_57 : f32 to vector<8x32xf32>
    %294 = arith.addf %293, %292 : vector<8x32xf32>
    %295 = arith.divf %293, %294 : vector<8x32xf32>
    %296 = vector.extract_strided_slice %283 {offsets = [0, 64], sizes = [8, 32], strides = [1, 1]} : vector<8x128xf32> to vector<8x32xf32>
    %297 = math.tanh %296 : vector<8x32xf32>
    %298 = vector.extract_strided_slice %283 {offsets = [0, 96], sizes = [8, 32], strides = [1, 1]} : vector<8x128xf32> to vector<8x32xf32>
    %299 = arith.negf %298 : vector<8x32xf32>
    %300 = math.exp %299 : vector<8x32xf32>
    %cst_58 = arith.constant 1.000000e+00 : f32
    %301 = vector.broadcast %cst_58 : f32 to vector<8x32xf32>
    %302 = arith.addf %301, %300 : vector<8x32xf32>
    %303 = arith.divf %301, %302 : vector<8x32xf32>
    %304 = arith.mulf %295, %277 : vector<8x32xf32>
    %305 = arith.mulf %289, %297 : vector<8x32xf32>
    %306 = arith.addf %304, %305 : vector<8x32xf32>
    %307 = math.tanh %306 : vector<8x32xf32>
    %308 = arith.mulf %303, %307 : vector<8x32xf32>
    %309 = vector.extract_strided_slice %249 {offsets = [2, 0, 0], sizes = [1, 8, 128], strides = [1, 1, 1]} : vector<8x8x128xf32> to vector<1x8x128xf32>
    %310 = vector.shape_cast %309 : vector<1x8x128xf32> to vector<8x128xf32>
    %cst_59 = arith.constant dense<0.000000e+00> : vector<8x128xf32>
    %311 = tpu.matmul %308, %250, %cst_59 {dimension_numbers = #tpu.dot_dimension_numbers<[1], [0], [0], [1], [0, 0, 1, 1], [], []>} : vector<8x32xf32>, vector<32x128xf32>, vector<8x128xf32> -> vector<8x128xf32>
    %312 = arith.addf %310, %311 : vector<8x128xf32>
    %313 = vector.extract_strided_slice %312 {offsets = [0, 0], sizes = [8, 32], strides = [1, 1]} : vector<8x128xf32> to vector<8x32xf32>
    %314 = arith.negf %313 : vector<8x32xf32>
    %315 = math.exp %314 : vector<8x32xf32>
    %cst_60 = arith.constant 1.000000e+00 : f32
    %316 = vector.broadcast %cst_60 : f32 to vector<8x32xf32>
    %317 = arith.addf %316, %315 : vector<8x32xf32>
    %318 = arith.divf %316, %317 : vector<8x32xf32>
    %319 = vector.extract_strided_slice %312 {offsets = [0, 32], sizes = [8, 32], strides = [1, 1]} : vector<8x128xf32> to vector<8x32xf32>
    %320 = arith.negf %319 : vector<8x32xf32>
    %321 = math.exp %320 : vector<8x32xf32>
    %cst_61 = arith.constant 1.000000e+00 : f32
    %322 = vector.broadcast %cst_61 : f32 to vector<8x32xf32>
    %323 = arith.addf %322, %321 : vector<8x32xf32>
    %324 = arith.divf %322, %323 : vector<8x32xf32>
    %325 = vector.extract_strided_slice %312 {offsets = [0, 64], sizes = [8, 32], strides = [1, 1]} : vector<8x128xf32> to vector<8x32xf32>
    %326 = math.tanh %325 : vector<8x32xf32>
    %327 = vector.extract_strided_slice %312 {offsets = [0, 96], sizes = [8, 32], strides = [1, 1]} : vector<8x128xf32> to vector<8x32xf32>
    %328 = arith.negf %327 : vector<8x32xf32>
    %329 = math.exp %328 : vector<8x32xf32>
    %cst_62 = arith.constant 1.000000e+00 : f32
    %330 = vector.broadcast %cst_62 : f32 to vector<8x32xf32>
    %331 = arith.addf %330, %329 : vector<8x32xf32>
    %332 = arith.divf %330, %331 : vector<8x32xf32>
    %333 = arith.mulf %324, %306 : vector<8x32xf32>
    %334 = arith.mulf %318, %326 : vector<8x32xf32>
    %335 = arith.addf %333, %334 : vector<8x32xf32>
    %336 = math.tanh %335 : vector<8x32xf32>
    %337 = arith.mulf %332, %336 : vector<8x32xf32>
    %338 = vector.extract_strided_slice %249 {offsets = [3, 0, 0], sizes = [1, 8, 128], strides = [1, 1, 1]} : vector<8x8x128xf32> to vector<1x8x128xf32>
    %339 = vector.shape_cast %338 : vector<1x8x128xf32> to vector<8x128xf32>
    %cst_63 = arith.constant dense<0.000000e+00> : vector<8x128xf32>
    %340 = tpu.matmul %337, %250, %cst_63 {dimension_numbers = #tpu.dot_dimension_numbers<[1], [0], [0], [1], [0, 0, 1, 1], [], []>} : vector<8x32xf32>, vector<32x128xf32>, vector<8x128xf32> -> vector<8x128xf32>
    %341 = arith.addf %339, %340 : vector<8x128xf32>
    %342 = vector.extract_strided_slice %341 {offsets = [0, 0], sizes = [8, 32], strides = [1, 1]} : vector<8x128xf32> to vector<8x32xf32>
    %343 = arith.negf %342 : vector<8x32xf32>
    %344 = math.exp %343 : vector<8x32xf32>
    %cst_64 = arith.constant 1.000000e+00 : f32
    %345 = vector.broadcast %cst_64 : f32 to vector<8x32xf32>
    %346 = arith.addf %345, %344 : vector<8x32xf32>
    %347 = arith.divf %345, %346 : vector<8x32xf32>
    %348 = vector.extract_strided_slice %341 {offsets = [0, 32], sizes = [8, 32], strides = [1, 1]} : vector<8x128xf32> to vector<8x32xf32>
    %349 = arith.negf %348 : vector<8x32xf32>
    %350 = math.exp %349 : vector<8x32xf32>
    %cst_65 = arith.constant 1.000000e+00 : f32
    %351 = vector.broadcast %cst_65 : f32 to vector<8x32xf32>
    %352 = arith.addf %351, %350 : vector<8x32xf32>
    %353 = arith.divf %351, %352 : vector<8x32xf32>
    %354 = vector.extract_strided_slice %341 {offsets = [0, 64], sizes = [8, 32], strides = [1, 1]} : vector<8x128xf32> to vector<8x32xf32>
    %355 = math.tanh %354 : vector<8x32xf32>
    %356 = vector.extract_strided_slice %341 {offsets = [0, 96], sizes = [8, 32], strides = [1, 1]} : vector<8x128xf32> to vector<8x32xf32>
    %357 = arith.negf %356 : vector<8x32xf32>
    %358 = math.exp %357 : vector<8x32xf32>
    %cst_66 = arith.constant 1.000000e+00 : f32
    %359 = vector.broadcast %cst_66 : f32 to vector<8x32xf32>
    %360 = arith.addf %359, %358 : vector<8x32xf32>
    %361 = arith.divf %359, %360 : vector<8x32xf32>
    %362 = arith.mulf %353, %335 : vector<8x32xf32>
    %363 = arith.mulf %347, %355 : vector<8x32xf32>
    %364 = arith.addf %362, %363 : vector<8x32xf32>
    %365 = math.tanh %364 : vector<8x32xf32>
    %366 = arith.mulf %361, %365 : vector<8x32xf32>
    %367 = vector.extract_strided_slice %249 {offsets = [4, 0, 0], sizes = [1, 8, 128], strides = [1, 1, 1]} : vector<8x8x128xf32> to vector<1x8x128xf32>
    %368 = vector.shape_cast %367 : vector<1x8x128xf32> to vector<8x128xf32>
    %cst_67 = arith.constant dense<0.000000e+00> : vector<8x128xf32>
    %369 = tpu.matmul %366, %250, %cst_67 {dimension_numbers = #tpu.dot_dimension_numbers<[1], [0], [0], [1], [0, 0, 1, 1], [], []>} : vector<8x32xf32>, vector<32x128xf32>, vector<8x128xf32> -> vector<8x128xf32>
    %370 = arith.addf %368, %369 : vector<8x128xf32>
    %371 = vector.extract_strided_slice %370 {offsets = [0, 0], sizes = [8, 32], strides = [1, 1]} : vector<8x128xf32> to vector<8x32xf32>
    %372 = arith.negf %371 : vector<8x32xf32>
    %373 = math.exp %372 : vector<8x32xf32>
    %cst_68 = arith.constant 1.000000e+00 : f32
    %374 = vector.broadcast %cst_68 : f32 to vector<8x32xf32>
    %375 = arith.addf %374, %373 : vector<8x32xf32>
    %376 = arith.divf %374, %375 : vector<8x32xf32>
    %377 = vector.extract_strided_slice %370 {offsets = [0, 32], sizes = [8, 32], strides = [1, 1]} : vector<8x128xf32> to vector<8x32xf32>
    %378 = arith.negf %377 : vector<8x32xf32>
    %379 = math.exp %378 : vector<8x32xf32>
    %cst_69 = arith.constant 1.000000e+00 : f32
    %380 = vector.broadcast %cst_69 : f32 to vector<8x32xf32>
    %381 = arith.addf %380, %379 : vector<8x32xf32>
    %382 = arith.divf %380, %381 : vector<8x32xf32>
    %383 = vector.extract_strided_slice %370 {offsets = [0, 64], sizes = [8, 32], strides = [1, 1]} : vector<8x128xf32> to vector<8x32xf32>
    %384 = math.tanh %383 : vector<8x32xf32>
    %385 = vector.extract_strided_slice %370 {offsets = [0, 96], sizes = [8, 32], strides = [1, 1]} : vector<8x128xf32> to vector<8x32xf32>
    %386 = arith.negf %385 : vector<8x32xf32>
    %387 = math.exp %386 : vector<8x32xf32>
    %cst_70 = arith.constant 1.000000e+00 : f32
    %388 = vector.broadcast %cst_70 : f32 to vector<8x32xf32>
    %389 = arith.addf %388, %387 : vector<8x32xf32>
    %390 = arith.divf %388, %389 : vector<8x32xf32>
    %391 = arith.mulf %382, %364 : vector<8x32xf32>
    %392 = arith.mulf %376, %384 : vector<8x32xf32>
    %393 = arith.addf %391, %392 : vector<8x32xf32>
    %394 = math.tanh %393 : vector<8x32xf32>
    %395 = arith.mulf %390, %394 : vector<8x32xf32>
    %396 = vector.extract_strided_slice %249 {offsets = [5, 0, 0], sizes = [1, 8, 128], strides = [1, 1, 1]} : vector<8x8x128xf32> to vector<1x8x128xf32>
    %397 = vector.shape_cast %396 : vector<1x8x128xf32> to vector<8x128xf32>
    %cst_71 = arith.constant dense<0.000000e+00> : vector<8x128xf32>
    %398 = tpu.matmul %395, %250, %cst_71 {dimension_numbers = #tpu.dot_dimension_numbers<[1], [0], [0], [1], [0, 0, 1, 1], [], []>} : vector<8x32xf32>, vector<32x128xf32>, vector<8x128xf32> -> vector<8x128xf32>
    %399 = arith.addf %397, %398 : vector<8x128xf32>
    %400 = vector.extract_strided_slice %399 {offsets = [0, 0], sizes = [8, 32], strides = [1, 1]} : vector<8x128xf32> to vector<8x32xf32>
    %401 = arith.negf %400 : vector<8x32xf32>
    %402 = math.exp %401 : vector<8x32xf32>
    %cst_72 = arith.constant 1.000000e+00 : f32
    %403 = vector.broadcast %cst_72 : f32 to vector<8x32xf32>
    %404 = arith.addf %403, %402 : vector<8x32xf32>
    %405 = arith.divf %403, %404 : vector<8x32xf32>
    %406 = vector.extract_strided_slice %399 {offsets = [0, 32], sizes = [8, 32], strides = [1, 1]} : vector<8x128xf32> to vector<8x32xf32>
    %407 = arith.negf %406 : vector<8x32xf32>
    %408 = math.exp %407 : vector<8x32xf32>
    %cst_73 = arith.constant 1.000000e+00 : f32
    %409 = vector.broadcast %cst_73 : f32 to vector<8x32xf32>
    %410 = arith.addf %409, %408 : vector<8x32xf32>
    %411 = arith.divf %409, %410 : vector<8x32xf32>
    %412 = vector.extract_strided_slice %399 {offsets = [0, 64], sizes = [8, 32], strides = [1, 1]} : vector<8x128xf32> to vector<8x32xf32>
    %413 = math.tanh %412 : vector<8x32xf32>
    %414 = vector.extract_strided_slice %399 {offsets = [0, 96], sizes = [8, 32], strides = [1, 1]} : vector<8x128xf32> to vector<8x32xf32>
    %415 = arith.negf %414 : vector<8x32xf32>
    %416 = math.exp %415 : vector<8x32xf32>
    %cst_74 = arith.constant 1.000000e+00 : f32
    %417 = vector.broadcast %cst_74 : f32 to vector<8x32xf32>
    %418 = arith.addf %417, %416 : vector<8x32xf32>
    %419 = arith.divf %417, %418 : vector<8x32xf32>
    %420 = arith.mulf %411, %393 : vector<8x32xf32>
    %421 = arith.mulf %405, %413 : vector<8x32xf32>
    %422 = arith.addf %420, %421 : vector<8x32xf32>
    %423 = math.tanh %422 : vector<8x32xf32>
    %424 = arith.mulf %419, %423 : vector<8x32xf32>
    %425 = vector.extract_strided_slice %249 {offsets = [6, 0, 0], sizes = [1, 8, 128], strides = [1, 1, 1]} : vector<8x8x128xf32> to vector<1x8x128xf32>
    %426 = vector.shape_cast %425 : vector<1x8x128xf32> to vector<8x128xf32>
    %cst_75 = arith.constant dense<0.000000e+00> : vector<8x128xf32>
    %427 = tpu.matmul %424, %250, %cst_75 {dimension_numbers = #tpu.dot_dimension_numbers<[1], [0], [0], [1], [0, 0, 1, 1], [], []>} : vector<8x32xf32>, vector<32x128xf32>, vector<8x128xf32> -> vector<8x128xf32>
    %428 = arith.addf %426, %427 : vector<8x128xf32>
    %429 = vector.extract_strided_slice %428 {offsets = [0, 0], sizes = [8, 32], strides = [1, 1]} : vector<8x128xf32> to vector<8x32xf32>
    %430 = arith.negf %429 : vector<8x32xf32>
    %431 = math.exp %430 : vector<8x32xf32>
    %cst_76 = arith.constant 1.000000e+00 : f32
    %432 = vector.broadcast %cst_76 : f32 to vector<8x32xf32>
    %433 = arith.addf %432, %431 : vector<8x32xf32>
    %434 = arith.divf %432, %433 : vector<8x32xf32>
    %435 = vector.extract_strided_slice %428 {offsets = [0, 32], sizes = [8, 32], strides = [1, 1]} : vector<8x128xf32> to vector<8x32xf32>
    %436 = arith.negf %435 : vector<8x32xf32>
    %437 = math.exp %436 : vector<8x32xf32>
    %cst_77 = arith.constant 1.000000e+00 : f32
    %438 = vector.broadcast %cst_77 : f32 to vector<8x32xf32>
    %439 = arith.addf %438, %437 : vector<8x32xf32>
    %440 = arith.divf %438, %439 : vector<8x32xf32>
    %441 = vector.extract_strided_slice %428 {offsets = [0, 64], sizes = [8, 32], strides = [1, 1]} : vector<8x128xf32> to vector<8x32xf32>
    %442 = math.tanh %441 : vector<8x32xf32>
    %443 = vector.extract_strided_slice %428 {offsets = [0, 96], sizes = [8, 32], strides = [1, 1]} : vector<8x128xf32> to vector<8x32xf32>
    %444 = arith.negf %443 : vector<8x32xf32>
    %445 = math.exp %444 : vector<8x32xf32>
    %cst_78 = arith.constant 1.000000e+00 : f32
    %446 = vector.broadcast %cst_78 : f32 to vector<8x32xf32>
    %447 = arith.addf %446, %445 : vector<8x32xf32>
    %448 = arith.divf %446, %447 : vector<8x32xf32>
    %449 = arith.mulf %440, %422 : vector<8x32xf32>
    %450 = arith.mulf %434, %442 : vector<8x32xf32>
    %451 = arith.addf %449, %450 : vector<8x32xf32>
    %452 = math.tanh %451 : vector<8x32xf32>
    %453 = arith.mulf %448, %452 : vector<8x32xf32>
    %454 = vector.extract_strided_slice %249 {offsets = [7, 0, 0], sizes = [1, 8, 128], strides = [1, 1, 1]} : vector<8x8x128xf32> to vector<1x8x128xf32>
    %455 = vector.shape_cast %454 : vector<1x8x128xf32> to vector<8x128xf32>
    %cst_79 = arith.constant dense<0.000000e+00> : vector<8x128xf32>
    %456 = tpu.matmul %453, %250, %cst_79 {dimension_numbers = #tpu.dot_dimension_numbers<[1], [0], [0], [1], [0, 0, 1, 1], [], []>} : vector<8x32xf32>, vector<32x128xf32>, vector<8x128xf32> -> vector<8x128xf32>
    %457 = arith.addf %455, %456 : vector<8x128xf32>
    %458 = vector.extract_strided_slice %457 {offsets = [0, 0], sizes = [8, 32], strides = [1, 1]} : vector<8x128xf32> to vector<8x32xf32>
    %459 = arith.negf %458 : vector<8x32xf32>
    %460 = math.exp %459 : vector<8x32xf32>
    %cst_80 = arith.constant 1.000000e+00 : f32
    %461 = vector.broadcast %cst_80 : f32 to vector<8x32xf32>
    %462 = arith.addf %461, %460 : vector<8x32xf32>
    %463 = arith.divf %461, %462 : vector<8x32xf32>
    %464 = vector.extract_strided_slice %457 {offsets = [0, 32], sizes = [8, 32], strides = [1, 1]} : vector<8x128xf32> to vector<8x32xf32>
    %465 = arith.negf %464 : vector<8x32xf32>
    %466 = math.exp %465 : vector<8x32xf32>
    %cst_81 = arith.constant 1.000000e+00 : f32
    %467 = vector.broadcast %cst_81 : f32 to vector<8x32xf32>
    %468 = arith.addf %467, %466 : vector<8x32xf32>
    %469 = arith.divf %467, %468 : vector<8x32xf32>
    %470 = vector.extract_strided_slice %457 {offsets = [0, 64], sizes = [8, 32], strides = [1, 1]} : vector<8x128xf32> to vector<8x32xf32>
    %471 = math.tanh %470 : vector<8x32xf32>
    %472 = vector.extract_strided_slice %457 {offsets = [0, 96], sizes = [8, 32], strides = [1, 1]} : vector<8x128xf32> to vector<8x32xf32>
    %473 = arith.negf %472 : vector<8x32xf32>
    %474 = math.exp %473 : vector<8x32xf32>
    %cst_82 = arith.constant 1.000000e+00 : f32
    %475 = vector.broadcast %cst_82 : f32 to vector<8x32xf32>
    %476 = arith.addf %475, %474 : vector<8x32xf32>
    %477 = arith.divf %475, %476 : vector<8x32xf32>
    %478 = arith.mulf %469, %451 : vector<8x32xf32>
    %479 = arith.mulf %463, %471 : vector<8x32xf32>
    %480 = arith.addf %478, %479 : vector<8x32xf32>
    %481 = math.tanh %480 : vector<8x32xf32>
    %482 = arith.mulf %477, %481 : vector<8x32xf32>
    %483 = tpu.concatenate %279, %308, %337, %366, %395, %424, %453, %482 in 0 : vector<8x32xf32>, vector<8x32xf32>, vector<8x32xf32>, vector<8x32xf32>, vector<8x32xf32>, vector<8x32xf32>, vector<8x32xf32>, vector<8x32xf32> -> vector<64x32xf32>
    %c0_83 = arith.constant 0 : index
    %c0_84 = arith.constant 0 : index
    %484 = vector.load %arg8[%c0_83, %c0_84] : memref<32x128xf32, #tpu.memory_space<vmem>>, vector<32x128xf32>
    %cst_85 = arith.constant dense<0.000000e+00> : vector<64x128xf32>
    %485 = tpu.matmul %483, %484, %cst_85 {dimension_numbers = #tpu.dot_dimension_numbers<[1], [0], [0], [1], [0, 0, 1, 1], [], []>} : vector<64x32xf32>, vector<32x128xf32>, vector<64x128xf32> -> vector<64x128xf32>
    %c0_86 = arith.constant 0 : index
    %c0_87 = arith.constant 0 : index
    %486 = vector.load %arg9[%c0_86, %c0_87] : memref<1x128xf32, #tpu.memory_space<vmem>>, vector<1x128xf32>
    %487 = vector.broadcast %486 : vector<1x128xf32> to vector<64x128xf32>
    %488 = arith.addf %485, %487 : vector<64x128xf32>
    %c0_88 = arith.constant 0 : index
    %c0_89 = arith.constant 0 : index
    %489 = vector.load %arg10[%c0_88, %c0_89] : memref<64x128xf32, #tpu.memory_space<vmem>>, vector<64x128xf32>
    tpu.vector_store %arg10[%c0_88, %c0_89], %488 {strides = array<i32>} : memref<64x128xf32, #tpu.memory_space<vmem>>, vector<64x128xf32>,
    return
  }
}

</mosaic_0001>

<bundles_post_ra>
// kernel: summary_model_forward.1
= control target key start
LH: loop header
LB: loop body
LE: loop exit
PB: predicated region body
PF: predicated region fallthrough
CT: control target
= control target key end

     0   :  { %vm54_vm0 = vcmask 261120   ;;  %v2621_v8 = vmov 0.0   ;;  %vm2622_vm1 = vmmov 0   ;;  %s2623_s21 = smov 64   ;;  %s3179_s2 = inlined_call_operand.vmem [shape: f32[32,128], index: 2, kind: input, shape index: {}]   ;;  %s3180_s0 = inlined_call_operand.vmem [shape: f32[8,8,32], index: 0, kind: input, shape index: {}]   ;;  %s3181_s3 = inlined_call_operand.vmem [shape: f32[32,128], index: 3, kind: input, shape index: {}]   ;;  %s3182_s4 = inlined_call_operand.vmem [shape: f32[1,128], index: 4, kind: input, shape index: {}]   ;;  %s3183_s5 = inlined_call_operand.vmem [shape: f32[32,128], index: 5, kind: input, shape index: {}]   ;;  %s3184_s6 = inlined_call_operand.vmem [shape: f32[32,128], index: 6, kind: input, shape index: {}]   ;;  %s3185_s1 = inlined_call_operand.vmem [shape: f32[8,8,32], index: 1, kind: input, shape index: {}]   ;;  %s3186_s7 = inlined_call_operand.vmem [shape: f32[1,128], index: 7, kind: input, shape index: {}]   ;;  %s3187_s8 = inlined_call_operand.vmem [shape: f32[32,128], index: 8, kind: input, shape index: {}]   ;;  %s3188_s9 = inlined_call_operand.vmem [shape: f32[1,128], index: 9, kind: input, shape index: {}]   ;;  %s3189_s10 = inlined_call_operand.vmem [shape: f32[64,128], index: 10, kind: output, shape index: {}]  }
   0x1   :  { %v46_v0 = vld [vmem:[%s3179_s2 + $0x18] sm:$0xff]  ;;  %v45_v1 = vld [vmem:[%s3179_s2 + $0x10] sm:$0xff]  ;;  %v44_v2 = vld [vmem:[%s3179_s2 + $0x8] sm:$0xff] }
   0x2   :  { %2481 = vmatprep.subr.mxu1 %v46_v0  ;;  %2245 = vmatprep.subr.mxu0 %v46_v0  ;;  %v39_v3 = vld [vmem:[%s3180_s0 + $0x20] sm:$0xff]  ;;  %v40_v5 = vld [vmem:[%s3180_s0 + $0x28] sm:$0xff]  ;;  %v2702_v6 = vld [vmem:[%s3181_s3 + $0x18] sm:$0xff] }
   0x3   :  { %2485 = vmatpush3.msra.mxu1 %v46_v0  ;;  %2246 = vmatpush3.msra.mxu0 %v46_v0  ;;  %v43_v4 = vld [vmem:[%s3179_s2] sm:$0xff]  ;;  %v36_v9 = vld [vmem:[%s3180_s0 + $0x8] sm:$0xff]  ;;  %v41_v10 = vld [vmem:[%s3180_s0 + $0x30] sm:$0xff] }
   0x4   :  { %2482 = vmatprep.subr.mxu1 %v45_v1  ;;  %2247 = vmatprep.subr.mxu0 %v45_v1  ;;  %v35_v7 = vld [vmem:[%s3180_s0] sm:$0xff]  ;;  %v2719_v11 = vld [vmem:[%s3181_s3 + $0x10] sm:$0xff]  ;;  %v42_v12 = vld [vmem:[%s3180_s0 + $0x38] sm:$0xff] }
   0x5   :  { %2486 = vmatpush3.msra.mxu1 %v45_v1  ;;  %2248 = vmatpush3.msra.mxu0 %v45_v1  ;;  %v2731_v13 = vld [vmem:[%s3181_s3 + $0x8] sm:$0xff]  ;;  %v2740_v14 = vld [vmem:[%s3181_s3] sm:$0xff]  ;;  %v37_v54 = vld [vmem:[%s3180_s0 + $0x10] sm:$0xff] }
   0x6   :  { %2483 = vmatprep.subr.mxu1 %v44_v2  ;;  %2249 = vmatprep.subr.mxu0 %v44_v2  ;;  %v2776_v20 = vld [vmem:[%s3182_s4] ss:$0 sm:$0xff]  ;;  %s2624_s4 = smov 32   ;;  %v38_v55 = vld [vmem:[%s3180_s0 + $0x18] sm:$0xff] }
   0x7   :  { %2487 = vmatpush3.msra.mxu1 %v44_v2  ;;  %2259 = vmatprep.mubr.msk.f32.mxu1 %vm54_vm0, %v39_v3 }
   0x8   :  { %2484 = vmatprep.subr.mxu1 %v43_v4  ;;  %2250 = vmatpush3.msra.mxu0 %v44_v2 }
   0x9   :  { %2488 = vmatpush3.msra.mxu1 %v43_v4  ;;  %2251 = vmatprep.subr.mxu0 %v43_v4 }
   0xa   :  { %2260 = vmatmul.mubr.msk.f32.vlgmr.msra.gmra.mxu1 %vm54_vm0, %v40_v5  ;;  %2265 = vmatprep.subr.mxu1 %v2621_v8 }
   0xb   :  { %2266 = vmatpush3.msra.mxu1 %v2702_v6  ;;  %2252 = vmatpush3.msra.mxu0 %v43_v4 }
   0xc   :  { %2253 = vmatprep.mubr.msk.f32.mxu0 %vm54_vm0, %v35_v7  ;;  %2267 = vmatprep.subr.mxu1 %v2621_v8 }
   0xd   :  { %2254 = vmatmul.mubr.msk.f32.vlgmr.msra.gmra.mxu0 %vm54_vm0, %v36_v9  ;;  %2262 = vmatprep.mubr.msk.f32.mxu1 %vm54_vm0, %v41_v10 }
   0xe   :  { %2268 = vmatpush3.msra.mxu1 %v2719_v11  ;;  %2287 = vmatprep.subr.mxu0 %v2621_v8 }
   0xf   :  { %2263 = vmatmul.mubr.msk.f32.gmra.mxu1 %vm54_vm0, %v42_v12  ;;  %2269 = vmatprep.subr.mxu1 %v2621_v8 }
  0x10   :  { %2270 = vmatpush3.msra.mxu1 %v2731_v13  ;;  %2273 = vmatprep.mubr.msk.f32.mxu1 %vm2622_vm1, %v2621_v8 }
  0x11   :  { %2271 = vmatprep.subr.mxu1 %v2621_v8  ;;  %2288 = vmatpush3.msra.mxu0 %v2702_v6 }
  0x12   :  { %2272 = vmatpush3.msra.mxu1 %v2740_v14  ;;  %2289 = vmatprep.subr.mxu0 %v2621_v8 }
  0x13   :  { %2274 = vmatmul.mubr.f32.vlgmr.msra.gmra.mxu1 %v2621_v8  ;;  %2276 = vmatprep.subr.mxu1 %v2621_v8 }
  0x14   :  { %2277 = vmatpush3.msra.mxu1 %v2702_v6  ;;  %2284 = vmatprep.mubr.msk.f32.mxu1 %vm2622_vm1, %v2621_v8 }
  0x15   :  { %2278 = vmatprep.subr.mxu1 %v2621_v8  ;;  %2290 = vmatpush3.msra.mxu0 %v2719_v11 }
  0x16   :  { %2279 = vmatpush3.msra.mxu1 %v2719_v11  ;;  %2291 = vmatprep.subr.mxu0 %v2621_v8 }
  0x17   :  { %2280 = vmatprep.subr.mxu1 %v2621_v8  ;;  %2292 = vmatpush3.msra.mxu0 %v2731_v13 }
  0x18   :  { %2281 = vmatpush3.msra.mxu1 %v2731_v13  ;;  %2293 = vmatprep.subr.mxu0 %v2621_v8 }
  0x19   :  { %2282 = vmatprep.subr.mxu1 %v2621_v8  ;;  %2294 = vmatpush3.msra.mxu0 %v2740_v14 }
  0x1a   :  { %2283 = vmatpush3.msra.mxu1 %v2740_v14  ;;  %2309 = vmatprep.subr.mxu0 %v2621_v8 }
  0x1b   :  { %2298 = vmatprep.subr.mxu1 %v2621_v8  ;;  %2256 = vmatprep.mubr.msk.f32.mxu0 %vm54_vm0, %v37_v54 }
  0x1c   :  { %2257 = vmatmul.mubr.msk.f32.gmra.mxu0 %vm54_vm0, %v38_v55 }
  0x1d   :  { %2295 = vmatprep.mubr.msk.f32.mxu0 %vm2622_vm1, %v2621_v8 }
  0xca   :  { %v2767_v15 = vpop.f32.mrf.mxu1 }
  0xcc   :  { %v2769_v16 = vpop.f32.mrf.mxu1 }
  0xcd   :  { %v2255_v17 = vpop.f32.mrf.mxu0 }
  0xce   :  { %v151_v40 = vadd.f32 %v2255_v17, %v2776_v20 }
  0xcf   :  { %v2771_v18 = vpop.f32.mrf.mxu1  ;;  %v145_v19 = vpop.f32.mrf.mxu0 }
  0xd0   :  { %v146_v22 = vadd.f32 %v2776_v20, %v145_v19 }
  0xd1   :  { %v2778_v21 = vpop.f32.mrf.mxu1 }
  0xd3   :  { %v257_v23 = vpop.f32.mrf.mxu1 }
  0xd4   :  { %v261_v24 = vadd.f32 %v257_v23, %v146_v22 }
  0xd5   :  { %v2275_v25 = vpop.f32.mrf.mxu1 }
  0xd6   :  { %2493 = vtanh.f32 %v261_v24  ;;  %v2080_v27 = vmul.f32 -1.442695, %v261_v24 }
  0xd8   :  { %2495 = vpow2.f32 %v2080_v27 }
  0xdc   :  { %v2258_v60 = vpop.f32.mrf.mxu0 }
  0xde   :  { %v155_v61 = vpop.f32.mrf.mxu0 }
  0xdf   :  { %v156_v62 = vadd.f32 %v2776_v20, %v155_v61 }
  0xe3   :  { %v2494_v26 = vpop.eup %2493 }
  0xe4   :  { %271 = vrot.lane.b32.xlu0 %v2494_v26, %s2623_s21  ;;  %v161_v26 = vadd.f32 %v2258_v60, %v2776_v20 }
  0xe5   :  { %v2496_v28 = vpop.eup %2495 }
  0xe6   :  { %v265_v29 = vadd.f32 1.0, %v2496_v28 }
  0xe8   :  { %2497 = vrcp.f32 %v265_v29 }
  0xf5   :  { %v2498_v30 = vpop.eup %2497 }
  0xf6   :  { %v269_v33 = vmul.f32 0.0, %v2498_v30 }
 0x156   :  { %v272_v31 = vpop.permute.xlu0 %271 }
 0x157   :  { %v274_v32 = vmul.f32 %v2498_v30, %v272_v31 }
 0x159   :  { %276 = vrot.lane.b32.xlu0 %v274_v32, %s2624_s4 }
 0x1cb   :  { %v277_v34 = vpop.permute.xlu0 %276 }
 0x1cc   :  { %v279_v35 = vadd.f32 %v277_v34, %v269_v33 }
 0x1ce   :  { %2499 = vtanh.f32 %v279_v35 }
 0x1db   :  { %v2500_v36 = vpop.eup %2499 }
 0x1dc   :  { %282 = vrot.lane.b32.xlu1 %v2500_v36, %s2623_s21 }
 0x24e   :  { %v283_v37 = vpop.permute.xlu1 %282 }
 0x24f   :  { %v285_v38 = vmul.f32 %v2498_v30, %v283_v37 }
 0x251   :  { %287 = vrot.lane.b32.xlu1 %v285_v38, %s2624_s4 }
 0x2c3   :  { %v288_v39 = vpop.permute.xlu1 %287 }
 0x2c4   :  { %2285 = vmatmul.mubr.msk.f32.vlgmr.msra.gmra.mxu1 %vm54_vm0, %v288_v39 }
 0x2c5   :  { %2299 = vmatpush3.msra.mxu1 %v2702_v6  ;;  %2306 = vmatprep.mubr.msk.f32.mxu1 %vm2622_vm1, %v2621_v8 }
 0x2c6   :  { %2300 = vmatprep.subr.mxu1 %v2621_v8 }
 0x2c7   :  { %2301 = vmatpush3.msra.mxu1 %v2719_v11 }
 0x2c8   :  { %2302 = vmatprep.subr.mxu1 %v2621_v8 }
 0x2c9   :  { %2303 = vmatpush3.msra.mxu1 %v2731_v13 }
 0x2ca   :  { %2304 = vmatprep.subr.mxu1 %v2621_v8 }
 0x2cb   :  { %2305 = vmatpush3.msra.mxu1 %v2740_v14 }
 0x2cc   :  { %2320 = vmatprep.subr.mxu1 %v2621_v8 }
 0x384   :  { %v357_v41 = vpop.f32.mrf.mxu1 }
 0x385   :  { %v361_v42 = vadd.f32 %v357_v41, %v151_v40 }
 0x386   :  { %v2286_v43 = vpop.f32.mrf.mxu1 }
 0x387   :  { %2501 = vtanh.f32 %v361_v42  ;;  %v2082_v45 = vmul.f32 -1.442695, %v361_v42 }
 0x389   :  { %2503 = vpow2.f32 %v2082_v45 }
 0x394   :  { %v2502_v44 = vpop.eup %2501 }
 0x395   :  { %371 = vrot.lane.b32.xlu0 %v2502_v44, %s2623_s21  ;;  %v166_v44 = vadd.f32 %v2776_v20, %v2769_v16 }
 0x396   :  { %v2504_v46 = vpop.eup %2503 }
 0x397   :  { %v365_v47 = vadd.f32 1.0, %v2504_v46 }
 0x399   :  { %2505 = vrcp.f32 %v365_v47 }
 0x3a6   :  { %v2506_v48 = vpop.eup %2505 }
 0x3a7   :  { %v369_v51 = vmul.f32 %v2506_v48, %v279_v35 }
 0x407   :  { %v372_v49 = vpop.permute.xlu0 %371 }
 0x408   :  { %v374_v50 = vmul.f32 %v2506_v48, %v372_v49 }
 0x40a   :  { %376 = vrot.lane.b32.xlu1 %v374_v50, %s2624_s4 }
 0x47c   :  { %v377_v52 = vpop.permute.xlu1 %376 }
 0x47d   :  { %v379_v53 = vadd.f32 %v377_v52, %v369_v51 }
 0x47f   :  { %2507 = vtanh.f32 %v379_v53 }
 0x48c   :  { %v2508_v56 = vpop.eup %2507 }
 0x48d   :  { %382 = vrot.lane.b32.xlu0 %v2508_v56, %s2623_s21 }
 0x4ff   :  { %v383_v57 = vpop.permute.xlu0 %382 }
 0x500   :  { %v385_v58 = vmul.f32 %v2506_v48, %v383_v57 }
 0x502   :  { %387 = vrot.lane.b32.xlu1 %v385_v58, %s2624_s4 }
 0x574   :  { %v388_v59 = vpop.permute.xlu1 %387 }
 0x575   :  { %2296 = vmatmul.mubr.msk.f32.vlgmr.msra.gmra.mxu0 %vm54_vm0, %v388_v59 }
 0x576   :  { %2310 = vmatpush3.msra.mxu0 %v2702_v6  ;;  %2317 = vmatprep.mubr.msk.f32.mxu0 %vm2622_vm1, %v2621_v8 }
 0x577   :  { %2311 = vmatprep.subr.mxu0 %v2621_v8 }
 0x578   :  { %2312 = vmatpush3.msra.mxu0 %v2719_v11 }
 0x579   :  { %2313 = vmatprep.subr.mxu0 %v2621_v8 }
 0x57a   :  { %2314 = vmatpush3.msra.mxu0 %v2731_v13 }
 0x57b   :  { %2315 = vmatprep.subr.mxu0 %v2621_v8 }
 0x57c   :  { %2316 = vmatpush3.msra.mxu0 %v2740_v14 }
 0x57d   :  { %2331 = vmatprep.subr.mxu0 %v2621_v8 }
 0x635   :  { %v457_v63 = vpop.f32.mrf.mxu0 }
 0x636   :  { %v461_v0 = vadd.f32 %v457_v63, %v156_v62 }
 0x637   :  { %v2297_v1 = vpop.f32.mrf.mxu0 }
 0x638   :  { %2509 = vtanh.f32 %v461_v0  ;;  %v2084_v3 = vmul.f32 -1.442695, %v461_v0 }
 0x63a   :  { %2511 = vpow2.f32 %v2084_v3 }
 0x645   :  { %v2510_v2 = vpop.eup %2509 }
 0x646   :  { %471 = vrot.lane.b32.xlu0 %v2510_v2, %s2623_s21 }
 0x647   :  { %v2512_v4 = vpop.eup %2511 }
 0x648   :  { %v465_v5 = vadd.f32 1.0, %v2512_v4 }
 0x64a   :  { %2513 = vrcp.f32 %v465_v5 }
 0x657   :  { %v2514_v7 = vpop.eup %2513 }
 0x658   :  { %v469_v12 = vmul.f32 %v2514_v7, %v379_v53 }
 0x6b8   :  { %v472_v9 = vpop.permute.xlu0 %471 }
 0x6b9   :  { %v474_v10 = vmul.f32 %v2514_v7, %v472_v9 }
 0x6bb   :  { %476 = vrot.lane.b32.xlu1 %v474_v10, %s2624_s4 }
 0x72d   :  { %v477_v17 = vpop.permute.xlu1 %476 }
 0x72e   :  { %v479_v19 = vadd.f32 %v477_v17, %v469_v12  ;;  %v176_v17 = vadd.f32 %v2776_v20, %v2778_v21 }
 0x730   :  { %2515 = vtanh.f32 %v479_v19 }
 0x73d   :  { %v2516_v22 = vpop.eup %2515 }
 0x73e   :  { %482 = vrot.lane.b32.xlu0 %v2516_v22, %s2623_s21 }
 0x7b0   :  { %v483_v23 = vpop.permute.xlu0 %482 }
 0x7b1   :  { %v485_v24 = vmul.f32 %v2514_v7, %v483_v23 }
 0x7b3   :  { %487 = vrot.lane.b32.xlu1 %v485_v24, %s2624_s4 }
 0x825   :  { %v488_v25 = vpop.permute.xlu1 %487 }
 0x826   :  { %2307 = vmatmul.mubr.msk.f32.vlgmr.msra.gmra.mxu1 %vm54_vm0, %v488_v25 }
 0x827   :  { %2321 = vmatpush3.msra.mxu1 %v2702_v6  ;;  %2328 = vmatprep.mubr.msk.f32.mxu1 %vm2622_vm1, %v2621_v8 }
 0x828   :  { %2322 = vmatprep.subr.mxu1 %v2621_v8 }
 0x829   :  { %2323 = vmatpush3.msra.mxu1 %v2719_v11 }
 0x82a   :  { %2324 = vmatprep.subr.mxu1 %v2621_v8 }
 0x82b   :  { %2325 = vmatpush3.msra.mxu1 %v2731_v13 }
 0x82c   :  { %2326 = vmatprep.subr.mxu1 %v2621_v8 }
 0x82d   :  { %2327 = vmatpush3.msra.mxu1 %v2740_v14 }
 0x82e   :  { %2342 = vmatprep.subr.mxu1 %v2621_v8 }
 0x8e6   :  { %v557_v27 = vpop.f32.mrf.mxu1 }
 0x8e7   :  { %v561_v28 = vadd.f32 %v557_v27, %v161_v26 }
 0x8e8   :  { %v2308_v29 = vpop.f32.mrf.mxu1 }
 0x8e9   :  { %2517 = vtanh.f32 %v561_v28  ;;  %v2086_v31 = vmul.f32 -1.442695, %v561_v28 }
 0x8eb   :  { %2519 = vpow2.f32 %v2086_v31 }
 0x8f6   :  { %v2518_v30 = vpop.eup %2517 }
 0x8f7   :  { %571 = vrot.lane.b32.xlu0 %v2518_v30, %s2623_s21 }
 0x8f8   :  { %v2520_v32 = vpop.eup %2519 }
 0x8f9   :  { %v565_v33 = vadd.f32 1.0, %v2520_v32 }
 0x8fb   :  { %2521 = vrcp.f32 %v565_v33 }
 0x908   :  { %v2522_v34 = vpop.eup %2521 }
 0x909   :  { %v569_v37 = vmul.f32 %v2522_v34, %v479_v19 }
 0x969   :  { %v572_v35 = vpop.permute.xlu0 %571 }
 0x96a   :  { %v574_v36 = vmul.f32 %v2522_v34, %v572_v35 }
 0x96c   :  { %576 = vrot.lane.b32.xlu1 %v574_v36, %s2624_s4 }
 0x9de   :  { %v577_v38 = vpop.permute.xlu1 %576 }
 0x9df   :  { %v579_v39 = vadd.f32 %v577_v38, %v569_v37  ;;  %v181_v37 = vadd.f32 %v2771_v18, %v2776_v20 }
 0x9e1   :  { %2523 = vtanh.f32 %v579_v39 }
 0x9ee   :  { %v2524_v40 = vpop.eup %2523 }
 0x9ef   :  { %582 = vrot.lane.b32.xlu0 %v2524_v40, %s2623_s21 }
 0xa61   :  { %v583_v41 = vpop.permute.xlu0 %582 }
 0xa62   :  { %v585_v42 = vmul.f32 %v2522_v34, %v583_v41 }
 0xa64   :  { %587 = vrot.lane.b32.xlu1 %v585_v42, %s2624_s4 }
 0xad6   :  { %v588_v43 = vpop.permute.xlu1 %587 }
 0xad7   :  { %2318 = vmatmul.mubr.msk.f32.vlgmr.msra.gmra.mxu0 %vm54_vm0, %v588_v43 }
 0xad8   :  { %2332 = vmatpush3.msra.mxu0 %v2702_v6  ;;  %2339 = vmatprep.mubr.msk.f32.mxu0 %vm2622_vm1, %v2621_v8 }
 0xad9   :  { %2333 = vmatprep.subr.mxu0 %v2621_v8 }
 0xada   :  { %2334 = vmatpush3.msra.mxu0 %v2719_v11 }
 0xadb   :  { %2335 = vmatprep.subr.mxu0 %v2621_v8 }
 0xadc   :  { %2336 = vmatpush3.msra.mxu0 %v2731_v13 }
 0xadd   :  { %2337 = vmatprep.subr.mxu0 %v2621_v8 }
 0xade   :  { %2338 = vmatpush3.msra.mxu0 %v2740_v14 }
 0xb97   :  { %v657_v45 = vpop.f32.mrf.mxu0 }
 0xb98   :  { %v661_v46 = vadd.f32 %v657_v45, %v166_v44 }
 0xb99   :  { %v2319_v47 = vpop.f32.mrf.mxu0 }
 0xb9a   :  { %2525 = vtanh.f32 %v661_v46  ;;  %v2088_v49 = vmul.f32 -1.442695, %v661_v46 }
 0xb9c   :  { %2527 = vpow2.f32 %v2088_v49 }
 0xba7   :  { %v2526_v48 = vpop.eup %2525 }
 0xba8   :  { %671 = vrot.lane.b32.xlu0 %v2526_v48, %s2623_s21 }
 0xba9   :  { %v2528_v50 = vpop.eup %2527 }
 0xbaa   :  { %v665_v51 = vadd.f32 1.0, %v2528_v50  ;;  %v996_v50 = vld [vmem:[%s3183_s5 + $0x10] sm:$0xff] }
 0xbac   :  { %2529 = vrcp.f32 %v665_v51  ;;  %v2902_v51 = vld [vmem:[%s3184_s6 + $0x18] sm:$0xff] }
 0xbb9   :  { %v2530_v52 = vpop.eup %2529 }
 0xbba   :  { %v669_v55 = vmul.f32 %v2530_v52, %v579_v39 }
 0xc1a   :  { %v672_v53 = vpop.permute.xlu0 %671 }
 0xc1b   :  { %v674_v54 = vmul.f32 %v2530_v52, %v672_v53  ;;  %v995_v53 = vld [vmem:[%s3183_s5 + $0x8] sm:$0xff] }
 0xc1d   :  { %676 = vrot.lane.b32.xlu1 %v674_v54, %s2624_s4  ;;  %v2914_v54 = vld [vmem:[%s3184_s6 + $0x10] sm:$0xff] }
 0xc8f   :  { %v677_v56 = vpop.permute.xlu1 %676 }
 0xc90   :  { %v679_v16 = vadd.f32 %v677_v56, %v669_v55  ;;  %v994_v55 = vld [vmem:[%s3183_s5] sm:$0xff]  ;;  %v2924_v56 = vld [vmem:[%s3184_s6 + $0x8] sm:$0xff] }
 0xc92   :  { %2531 = vtanh.f32 %v679_v16 }
 0xc9f   :  { %v2532_v57 = vpop.eup %2531 }
 0xca0   :  { %682 = vrot.lane.b32.xlu0 %v2532_v57, %s2623_s21  ;;  %v2934_v57 = vld [vmem:[%s3184_s6] sm:$0xff] }
 0xd12   :  { %v683_v58 = vpop.permute.xlu0 %682 }
 0xd13   :  { %v685_v59 = vmul.f32 %v2530_v52, %v683_v58  ;;  %v986_v52 = vld [vmem:[%s3185_s1] sm:$0xff] }
 0xd15   :  { %687 = vrot.lane.b32.xlu1 %v685_v59, %s2624_s4 }
 0xd87   :  { %v688_v60 = vpop.permute.xlu1 %687 }
 0xd88   :  { %2329 = vmatmul.mubr.msk.f32.vlgmr.msra.gmra.mxu1 %vm54_vm0, %v688_v60 }
 0xd89   :  { %2343 = vmatpush3.msra.mxu1 %v2702_v6  ;;  %2350 = vmatprep.mubr.msk.f32.mxu1 %vm2622_vm1, %v2621_v8  ;;  %v171_v6 = vadd.f32 %v2767_v15, %v2776_v20  ;;  %v997_v20 = vld [vmem:[%s3183_s5 + $0x18] sm:$0xff] }
 0xd8a   :  { %2344 = vmatprep.subr.mxu1 %v2621_v8  ;;  %2353 = vmatprep.subr.mxu0 %v997_v20 }
 0xd8b   :  { %2345 = vmatpush3.msra.mxu1 %v2719_v11 }
 0xd8c   :  { %2346 = vmatprep.subr.mxu1 %v2621_v8 }
 0xd8d   :  { %2347 = vmatpush3.msra.mxu1 %v2731_v13 }
 0xd8e   :  { %2348 = vmatprep.subr.mxu1 %v2621_v8 }
 0xd8f   :  { %2349 = vmatpush3.msra.mxu1 %v2740_v14 }
 0xd90   :  { %2373 = vmatprep.subr.mxu1 %v2621_v8 }
 0xe48   :  { %v757_v61 = vpop.f32.mrf.mxu1 }
 0xe49   :  { %v761_v62 = vadd.f32 %v757_v61, %v171_v6 }
 0xe4a   :  { %v2330_v63 = vpop.f32.mrf.mxu1 }
 0xe4b   :  { %2533 = vtanh.f32 %v761_v62  ;;  %v2090_v11 = vmul.f32 -1.442695, %v761_v62  ;;  %v2966_v62 = vld [vmem:[%s3186_s7] ss:$0 sm:$0xff] }
 0xe4d   :  { %2535 = vpow2.f32 %v2090_v11 }
 0xe58   :  { %v2534_v0 = vpop.eup %2533 }
 0xe59   :  { %771 = vrot.lane.b32.xlu0 %v2534_v0, %s2623_s21 }
 0xe5a   :  { %v2536_v1 = vpop.eup %2535 }
 0xe5b   :  { %v765_v13 = vadd.f32 1.0, %v2536_v1 }
 0xe5d   :  { %2537 = vrcp.f32 %v765_v13 }
 0xe6a   :  { %v2538_v2 = vpop.eup %2537 }
 0xe6b   :  { %v769_v4 = vmul.f32 %v2538_v2, %v679_v16  ;;  %v987_v16 = vld [vmem:[%s3185_s1 + $0x8] sm:$0xff] }
 0xecb   :  { %v772_v3 = vpop.permute.xlu0 %771 }
 0xecc   :  { %v774_v14 = vmul.f32 %v2538_v2, %v772_v3 }
 0xece   :  { %776 = vrot.lane.b32.xlu1 %v774_v14, %s2624_s4 }
 0xf40   :  { %v777_v5 = vpop.permute.xlu1 %776 }
 0xf41   :  { %v779_v15 = vadd.f32 %v777_v5, %v769_v4 }
 0xf43   :  { %2539 = vtanh.f32 %v779_v15 }
 0xf50   :  { %v2540_v7 = vpop.eup %2539 }
 0xf51   :  { %782 = vrot.lane.b32.xlu0 %v2540_v7, %s2623_s21 }
 0xfc3   :  { %v783_v9 = vpop.permute.xlu0 %782 }
 0xfc4   :  { %v785_v10 = vmul.f32 %v2538_v2, %v783_v9 }
 0xfc6   :  { %787 = vrot.lane.b32.xlu1 %v785_v10, %s2624_s4 }
0x1038   :  { %v788_v12 = vpop.permute.xlu1 %787 }
0x1039   :  { %2340 = vmatmul.mubr.msk.f32.vlgmr.msra.gmra.mxu0 %vm54_vm0, %v788_v12 }
0x103a   :  { %2354 = vmatpush3.msra.mxu0 %v997_v20  ;;  %2361 = vmatprep.mubr.msk.f32.mxu0 %vm54_vm0, %v986_v52 }
0x103b   :  { %2355 = vmatprep.subr.mxu0 %v996_v50 }
0x103c   :  { %2356 = vmatpush3.msra.mxu0 %v996_v50 }
0x103d   :  { %2357 = vmatprep.subr.mxu0 %v995_v53 }
0x103e   :  { %2358 = vmatpush3.msra.mxu0 %v995_v53 }
0x103f   :  { %2359 = vmatprep.subr.mxu0 %v994_v55 }
0x1040   :  { %2360 = vmatpush3.msra.mxu0 %v994_v55 }
0x1041   :  { %2362 = vmatmul.mubr.msk.f32.vlgmr.msra.gmra.mxu0 %vm54_vm0, %v987_v16  ;;  %2395 = vmatprep.subr.mxu0 %v2621_v8 }
0x1042   :  { %2396 = vmatpush3.msra.mxu0 %v2902_v51 }
0x1043   :  { %2397 = vmatprep.subr.mxu0 %v2621_v8 }
0x1044   :  { %2398 = vmatpush3.msra.mxu0 %v2914_v54 }
0x1045   :  { %2399 = vmatprep.subr.mxu0 %v2621_v8 }
0x1046   :  { %2400 = vmatpush3.msra.mxu0 %v2924_v56 }
0x1047   :  { %2401 = vmatprep.subr.mxu0 %v2621_v8 }
0x1048   :  { %2402 = vmatpush3.msra.mxu0 %v2934_v57 }
0x1049   :  { %2417 = vmatprep.subr.mxu0 %v2621_v8 }
0x10f9   :  { %v857_v19 = vpop.f32.mrf.mxu0 }
0x10fa   :  { %v861_v22 = vadd.f32 %v857_v19, %v176_v17 }
0x10fb   :  { %v2341_v23 = vpop.f32.mrf.mxu0 }
0x10fc   :  { %2541 = vtanh.f32 %v861_v22  ;;  %v2092_v25 = vmul.f32 -1.442695, %v861_v22 }
0x10fe   :  { %2543 = vpow2.f32 %v2092_v25 }
0x1101   :  { %v2363_v61 = vpop.f32.mrf.mxu0 }
0x1103   :  { %v1095_v63 = vpop.f32.mrf.mxu0 }
0x1104   :  { %v1096_v0 = vadd.f32 %v2966_v62, %v1095_v63 }
0x1109   :  { %v2542_v24 = vpop.eup %2541 }
0x110a   :  { %871 = vrot.lane.b32.xlu0 %v2542_v24, %s2623_s21  ;;  %v1101_v24 = vadd.f32 %v2363_v61, %v2966_v62 }
0x110b   :  { %v2544_v26 = vpop.eup %2543 }
0x110c   :  { %v865_v27 = vadd.f32 1.0, %v2544_v26 }
0x110e   :  { %2545 = vrcp.f32 %v865_v27 }
0x111b   :  { %v2546_v28 = vpop.eup %2545 }
0x111c   :  { %v869_v31 = vmul.f32 %v2546_v28, %v779_v15 }
0x117c   :  { %v872_v29 = vpop.permute.xlu0 %871 }
0x117d   :  { %v874_v30 = vmul.f32 %v2546_v28, %v872_v29 }
0x117f   :  { %876 = vrot.lane.b32.xlu1 %v874_v30, %s2624_s4 }
0x11f1   :  { %v877_v32 = vpop.permute.xlu1 %876 }
0x11f2   :  { %v879_v21 = vadd.f32 %v877_v32, %v869_v31 }
0x11f4   :  { %2547 = vtanh.f32 %v879_v21 }
0x1201   :  { %v2548_v33 = vpop.eup %2547 }
0x1202   :  { %882 = vrot.lane.b32.xlu0 %v2548_v33, %s2623_s21 }
0x1274   :  { %v883_v34 = vpop.permute.xlu0 %882 }
0x1275   :  { %v885_v35 = vmul.f32 %v2546_v28, %v883_v34 }
0x1277   :  { %887 = vrot.lane.b32.xlu1 %v885_v35, %s2624_s4 }
0x12e9   :  { %v888_v36 = vpop.permute.xlu1 %887 }
0x12ea   :  { %2351 = vmatmul.mubr.msk.f32.vlgmr.msra.gmra.mxu1 %vm54_vm0, %v888_v36 }
0x12eb   :  { %2381 = vmatprep.mubr.msk.f32.mxu1 %vm2622_vm1, %v2621_v8  ;;  %2374 = vmatpush3.msra.mxu1 %v2902_v51 }
0x12ec   :  { %2375 = vmatprep.subr.mxu1 %v2621_v8 }
0x12ed   :  { %2376 = vmatpush3.msra.mxu1 %v2914_v54 }
0x12ee   :  { %2377 = vmatprep.subr.mxu1 %v2621_v8 }
0x12ef   :  { %2378 = vmatpush3.msra.mxu1 %v2924_v56 }
0x12f0   :  { %2379 = vmatprep.subr.mxu1 %v2621_v8 }
0x12f1   :  { %2380 = vmatpush3.msra.mxu1 %v2934_v57 }
0x12f2   :  { %2384 = vmatprep.subr.mxu1 %v2621_v8 }
0x13aa   :  { %v957_v38 = vpop.f32.mrf.mxu1 }
0x13ab   :  { %v961_v39 = vadd.f32 %v957_v38, %v181_v37  ;;  %v988_v37 = vld [vmem:[%s3185_s1 + $0x10] sm:$0xff]  ;;  %v989_v38 = vld [vmem:[%s3185_s1 + $0x18] sm:$0xff] }
0x13ac   :  { %v2352_v40 = vpop.f32.mrf.mxu1  ;;  %2364 = vmatprep.mubr.msk.f32.mxu0 %vm54_vm0, %v988_v37 }
0x13ad   :  { %2549 = vtanh.f32 %v961_v39  ;;  %v2094_v42 = vmul.f32 -1.442695, %v961_v39  ;;  %v990_v39 = vld [vmem:[%s3185_s1 + $0x20] sm:$0xff]  ;;  %2365 = vmatmul.mubr.msk.f32.gmra.mxu0 %vm54_vm0, %v989_v38  ;;  %v991_v40 = vld [vmem:[%s3185_s1 + $0x28] sm:$0xff] }
0x13ae   :  { %2367 = vmatprep.mubr.msk.f32.mxu0 %vm54_vm0, %v990_v39 }
0x13af   :  { %2551 = vpow2.f32 %v2094_v42  ;;  %v993_v42 = vld [vmem:[%s3185_s1 + $0x38] sm:$0xff] }
0x13b1   :  { %2368 = vmatmul.mubr.msk.f32.gmra.mxu0 %vm54_vm0, %v991_v40 }
0x13ba   :  { %v2550_v41 = vpop.eup %2549 }
0x13bb   :  { %971 = vrot.lane.b32.xlu0 %v2550_v41, %s2623_s21  ;;  %v992_v41 = vld [vmem:[%s3185_s1 + $0x30] sm:$0xff] }
0x13bc   :  { %v2552_v43 = vpop.eup %2551  ;;  %2370 = vmatprep.mubr.msk.f32.mxu0 %vm54_vm0, %v992_v41 }
0x13bd   :  { %v965_v44 = vadd.f32 1.0, %v2552_v43  ;;  %2371 = vmatmul.mubr.msk.f32.gmra.mxu0 %vm54_vm0, %v993_v42 }
0x13be   :  { %2403 = vmatprep.mubr.msk.f32.mxu0 %vm2622_vm1, %v2621_v8 }
0x13bf   :  { %2553 = vrcp.f32 %v965_v44 }
0x13cc   :  { %v2554_v45 = vpop.eup %2553 }
0x13cd   :  { %v969_v48 = vmul.f32 %v2554_v45, %v879_v21 }
0x142d   :  { %v972_v46 = vpop.permute.xlu0 %971 }
0x142e   :  { %v974_v47 = vmul.f32 %v2554_v45, %v972_v46 }
0x1430   :  { %976 = vrot.lane.b32.xlu1 %v974_v47, %s2624_s4 }
0x146d   :  { %v2366_v47 = vpop.f32.mrf.mxu0 }
0x14a2   :  { %v977_v49 = vpop.permute.xlu1 %976 }
0x14a3   :  { %v2890_v18 = vadd.f32 %v977_v49, %v969_v48  ;;  %v1105_v48 = vpop.f32.mrf.mxu0 }
0x14a4   :  { %v1106_v52 = vadd.f32 %v2966_v62, %v1105_v48 }
0x14a5   :  { %2555 = vtanh.f32 %v2890_v18  ;;  %v3033_v49 = vpop.f32.mrf.mxu0 }
0x14b2   :  { %v2556_v58 = vpop.eup %2555 }
0x14b3   :  { %982 = vrot.lane.b32.xlu0 %v2556_v58, %s2623_s21 }
0x1525   :  { %v983_v59 = vpop.permute.xlu0 %982 }
0x1526   :  { %v985_v60 = vmul.f32 %v2554_v45, %v983_v59 }
0x1528   :  { %1139 = vrot.lane.b32.xlu1 %v985_v60, %s2624_s4 }
0x159a   :  { %v1140_v6 = vpop.permute.xlu1 %1139 }
0x159b   :  { %2382 = vmatmul.mubr.msk.f32.vlgmr.msra.gmra.mxu1 %vm54_vm0, %v1140_v6 }
0x159c   :  { %2385 = vmatpush3.msra.mxu1 %v2902_v51  ;;  %2392 = vmatprep.mubr.msk.f32.mxu1 %vm2622_vm1, %v2621_v8 }
0x159d   :  { %2386 = vmatprep.subr.mxu1 %v2621_v8 }
0x159e   :  { %2387 = vmatpush3.msra.mxu1 %v2914_v54 }
0x159f   :  { %2388 = vmatprep.subr.mxu1 %v2621_v8 }
0x15a0   :  { %2389 = vmatpush3.msra.mxu1 %v2924_v56 }
0x15a1   :  { %2390 = vmatprep.subr.mxu1 %v2621_v8 }
0x15a2   :  { %2391 = vmatpush3.msra.mxu1 %v2934_v57 }
0x15a3   :  { %2406 = vmatprep.subr.mxu1 %v2621_v8 }
0x165b   :  { %v1209_v11 = vpop.f32.mrf.mxu1 }
0x165c   :  { %v1213_v1 = vadd.f32 %v1209_v11, %v1096_v0 }
0x165d   :  { %v2383_v13 = vpop.f32.mrf.mxu1 }
0x165e   :  { %2557 = vtanh.f32 %v1213_v1  ;;  %v2105_v3 = vmul.f32 -1.442695, %v1213_v1 }
0x1660   :  { %2559 = vpow2.f32 %v2105_v3 }
0x166b   :  { %v2558_v2 = vpop.eup %2557 }
0x166c   :  { %1223 = vrot.lane.b32.xlu0 %v2558_v2, %s2623_s21 }
0x166d   :  { %v2560_v14 = vpop.eup %2559 }
0x166e   :  { %v1217_v4 = vadd.f32 1.0, %v2560_v14 }
0x1670   :  { %2561 = vrcp.f32 %v1217_v4 }
0x167d   :  { %v2562_v5 = vpop.eup %2561 }
0x167e   :  { %v1221_v9 = vmul.f32 %v2562_v5, %v2890_v18  ;;  %v3035_v18 = vpop.f32.mrf.mxu0 }
0x1680   :  { %v3037_v20 = vpop.f32.mrf.mxu0 }
0x1682   :  { %v3039_v50 = vpop.f32.mrf.mxu0 }
0x16de   :  { %v1224_v15 = vpop.permute.xlu0 %1223 }
0x16df   :  { %v1226_v7 = vmul.f32 %v2562_v5, %v1224_v15 }
0x16e1   :  { %1228 = vrot.lane.b32.xlu1 %v1226_v7, %s2624_s4 }
0x1753   :  { %v1229_v10 = vpop.permute.xlu1 %1228 }
0x1754   :  { %v1231_v12 = vadd.f32 %v1229_v10, %v1221_v9 }
0x1756   :  { %2563 = vtanh.f32 %v1231_v12 }
0x1763   :  { %v2564_v17 = vpop.eup %2563 }
0x1764   :  { %1234 = vrot.lane.b32.xlu0 %v2564_v17, %s2623_s21 }
0x17d6   :  { %v1235_v19 = vpop.permute.xlu0 %1234 }
0x17d7   :  { %v1237_v22 = vmul.f32 %v2562_v5, %v1235_v19  ;;  %v1111_v5 = vadd.f32 %v2366_v47, %v2966_v62 }
0x17d9   :  { %1239 = vrot.lane.b32.xlu1 %v1237_v22, %s2624_s4 }
0x184b   :  { %v2974_v23 = vpop.permute.xlu1 %1239 }
0x184c   :  { %2393 = vmatmul.mubr.msk.f32.vlgmr.msra.gmra.mxu1 %vm54_vm0, %v2974_v23 }
0x184d   :  { %2407 = vmatpush3.msra.mxu1 %v2902_v51  ;;  %2414 = vmatprep.mubr.msk.f32.mxu1 %vm2622_vm1, %v2621_v8 }
0x184e   :  { %2408 = vmatprep.subr.mxu1 %v2621_v8 }
0x184f   :  { %2409 = vmatpush3.msra.mxu1 %v2914_v54 }
0x1850   :  { %2410 = vmatprep.subr.mxu1 %v2621_v8 }
0x1851   :  { %2411 = vmatpush3.msra.mxu1 %v2924_v56 }
0x1852   :  { %2412 = vmatprep.subr.mxu1 %v2621_v8 }
0x1853   :  { %2413 = vmatpush3.msra.mxu1 %v2934_v57 }
0x1854   :  { %2428 = vmatprep.subr.mxu1 %v2621_v8 }
0x190c   :  { %v1309_v25 = vpop.f32.mrf.mxu1 }
0x190d   :  { %v1313_v26 = vadd.f32 %v1309_v25, %v1101_v24 }
0x190e   :  { %v2394_v27 = vpop.f32.mrf.mxu1 }
0x190f   :  { %2565 = vtanh.f32 %v1313_v26  ;;  %v2107_v29 = vmul.f32 -1.442695, %v1313_v26 }
0x1911   :  { %2567 = vpow2.f32 %v2107_v29 }
0x191c   :  { %v2566_v28 = vpop.eup %2565 }
0x191d   :  { %1323 = vrot.lane.b32.xlu0 %v2566_v28, %s2623_s21 }
0x191e   :  { %v2568_v30 = vpop.eup %2567 }
0x191f   :  { %v1317_v31 = vadd.f32 1.0, %v2568_v30 }
0x1921   :  { %2569 = vrcp.f32 %v1317_v31 }
0x192e   :  { %v2570_v32 = vpop.eup %2569 }
0x192f   :  { %v1321_v34 = vmul.f32 %v2570_v32, %v1231_v12 }
0x198f   :  { %v1324_v21 = vpop.permute.xlu0 %1323 }
0x1990   :  { %v1326_v33 = vmul.f32 %v2570_v32, %v1324_v21  ;;  %v1116_v21 = vadd.f32 %v2966_v62, %v3035_v18 }
0x1992   :  { %1328 = vrot.lane.b32.xlu1 %v1326_v33, %s2624_s4 }
0x1a04   :  { %v1329_v35 = vpop.permute.xlu1 %1328 }
0x1a05   :  { %v1331_v36 = vadd.f32 %v1329_v35, %v1321_v34 }
0x1a07   :  { %2571 = vtanh.f32 %v1331_v36 }
0x1a14   :  { %v2572_v43 = vpop.eup %2571 }
0x1a15   :  { %1334 = vrot.lane.b32.xlu0 %v2572_v43, %s2623_s21 }
0x1a87   :  { %v1335_v44 = vpop.permute.xlu0 %1334 }
0x1a88   :  { %v1337_v45 = vmul.f32 %v2570_v32, %v1335_v44 }
0x1a8a   :  { %1339 = vrot.lane.b32.xlu1 %v1337_v45, %s2624_s4 }
0x1afc   :  { %v3019_v46 = vpop.permute.xlu1 %1339 }
0x1afd   :  { %2404 = vmatmul.mubr.msk.f32.vlgmr.msra.gmra.mxu0 %vm54_vm0, %v3019_v46 }
0x1afe   :  { %2418 = vmatpush3.msra.mxu0 %v2902_v51  ;;  %2425 = vmatprep.mubr.msk.f32.mxu0 %vm2622_vm1, %v2621_v8 }
0x1aff   :  { %2419 = vmatprep.subr.mxu0 %v2621_v8 }
0x1b00   :  { %2420 = vmatpush3.msra.mxu0 %v2914_v54 }
0x1b01   :  { %2421 = vmatprep.subr.mxu0 %v2621_v8 }
0x1b02   :  { %2422 = vmatpush3.msra.mxu0 %v2924_v56 }
0x1b03   :  { %2423 = vmatprep.subr.mxu0 %v2621_v8 }
0x1b04   :  { %2424 = vmatpush3.msra.mxu0 %v2934_v57 }
0x1b05   :  { %2439 = vmatprep.subr.mxu0 %v2621_v8 }
0x1bbd   :  { %v1409_v53 = vpop.f32.mrf.mxu0 }
0x1bbe   :  { %v1413_v55 = vadd.f32 %v1409_v53, %v1106_v52  ;;  %v1121_v53 = vadd.f32 %v3033_v49, %v2966_v62 }
0x1bbf   :  { %v2405_v16 = vpop.f32.mrf.mxu0 }
0x1bc0   :  { %2573 = vtanh.f32 %v1413_v55  ;;  %v2109_v59 = vmul.f32 -1.442695, %v1413_v55 }
0x1bc2   :  { %2575 = vpow2.f32 %v2109_v59 }
0x1bcd   :  { %v2574_v58 = vpop.eup %2573 }
0x1bce   :  { %1423 = vrot.lane.b32.xlu0 %v2574_v58, %s2623_s21 }
0x1bcf   :  { %v2576_v60 = vpop.eup %2575 }
0x1bd0   :  { %v1417_v6 = vadd.f32 1.0, %v2576_v60 }
0x1bd2   :  { %2577 = vrcp.f32 %v1417_v6 }
0x1bdf   :  { %v2578_v61 = vpop.eup %2577 }
0x1be0   :  { %v1421_v11 = vmul.f32 %v2578_v61, %v1331_v36 }
0x1c40   :  { %v1424_v63 = vpop.permute.xlu0 %1423 }
0x1c41   :  { %v1426_v0 = vmul.f32 %v2578_v61, %v1424_v63  ;;  %v1941_v63 = vld [vmem:[%s3187_s8 + $0x18] sm:$0xff] }
0x1c43   :  { %1428 = vrot.lane.b32.xlu1 %v1426_v0, %s2624_s4 }
0x1cb5   :  { %v1429_v1 = vpop.permute.xlu1 %1428 }
0x1cb6   :  { %v1431_v13 = vadd.f32 %v1429_v1, %v1421_v11 }
0x1cb8   :  { %2579 = vtanh.f32 %v1431_v13 }
0x1cc5   :  { %v2580_v2 = vpop.eup %2579 }
0x1cc6   :  { %1434 = vrot.lane.b32.xlu0 %v2580_v2, %s2623_s21  ;;  %v1940_v2 = vld [vmem:[%s3187_s8 + $0x10] sm:$0xff] }
0x1d38   :  { %v1435_v3 = vpop.permute.xlu0 %1434 }
0x1d39   :  { %v1437_v14 = vmul.f32 %v2578_v61, %v1435_v3  ;;  %v1939_v3 = vld [vmem:[%s3187_s8 + $0x8] sm:$0xff] }
0x1d3b   :  { %1439 = vrot.lane.b32.xlu1 %v1437_v14, %s2624_s4  ;;  %v1938_v14 = vld [vmem:[%s3187_s8] sm:$0xff] }
0x1dad   :  { %v3046_v4 = vpop.permute.xlu1 %1439 }
0x1dae   :  { %2415 = vmatmul.mubr.msk.f32.vlgmr.msra.gmra.mxu1 %vm54_vm0, %v3046_v4 }
0x1daf   :  { %2429 = vmatpush3.msra.mxu1 %v2902_v51  ;;  %2436 = vmatprep.mubr.msk.f32.mxu1 %vm2622_vm1, %v2621_v8 }
0x1db0   :  { %2430 = vmatprep.subr.mxu1 %v2621_v8 }
0x1db1   :  { %2431 = vmatpush3.msra.mxu1 %v2914_v54 }
0x1db2   :  { %2432 = vmatprep.subr.mxu1 %v2621_v8 }
0x1db3   :  { %2433 = vmatpush3.msra.mxu1 %v2924_v56 }
0x1db4   :  { %2434 = vmatprep.subr.mxu1 %v2621_v8 }
0x1db5   :  { %2435 = vmatpush3.msra.mxu1 %v2934_v57 }
0x1db6   :  { %2450 = vmatprep.subr.mxu1 %v2621_v8 }
0x1e6e   :  { %v1509_v15 = vpop.f32.mrf.mxu1 }
0x1e6f   :  { %v1513_v7 = vadd.f32 %v1509_v15, %v1111_v5 }
0x1e70   :  { %v2416_v9 = vpop.f32.mrf.mxu1 }
0x1e71   :  { %2581 = vtanh.f32 %v1513_v7  ;;  %v2111_v12 = vmul.f32 -1.442695, %v1513_v7 }
0x1e73   :  { %2583 = vpow2.f32 %v2111_v12 }
0x1e7e   :  { %v2582_v10 = vpop.eup %2581 }
0x1e7f   :  { %1523 = vrot.lane.b32.xlu0 %v2582_v10, %s2623_s21 }
0x1e80   :  { %v2584_v17 = vpop.eup %2583 }
0x1e81   :  { %v1517_v19 = vadd.f32 1.0, %v2584_v17 }
0x1e83   :  { %2585 = vrcp.f32 %v1517_v19 }
0x1e90   :  { %v2586_v22 = vpop.eup %2585 }
0x1e91   :  { %v1521_v26 = vmul.f32 %v2586_v22, %v1431_v13 }
0x1ef1   :  { %v1524_v24 = vpop.permute.xlu0 %1523 }
0x1ef2   :  { %v1526_v25 = vmul.f32 %v2586_v22, %v1524_v24 }
0x1ef4   :  { %1528 = vrot.lane.b32.xlu1 %v1526_v25, %s2624_s4 }
0x1f66   :  { %v1529_v27 = vpop.permute.xlu1 %1528 }
0x1f67   :  { %v1531_v28 = vadd.f32 %v1529_v27, %v1521_v26 }
0x1f69   :  { %2587 = vtanh.f32 %v1531_v28 }
0x1f76   :  { %v2588_v29 = vpop.eup %2587 }
0x1f77   :  { %1534 = vrot.lane.b32.xlu0 %v2588_v29, %s2623_s21 }
0x1fe9   :  { %v1535_v30 = vpop.permute.xlu0 %1534 }
0x1fea   :  { %v1537_v31 = vmul.f32 %v2586_v22, %v1535_v30 }
0x1fec   :  { %1539 = vrot.lane.b32.xlu1 %v1537_v31, %s2624_s4 }
0x205e   :  { %v3065_v32 = vpop.permute.xlu1 %1539 }
0x205f   :  { %2426 = vmatmul.mubr.msk.f32.vlgmr.msra.gmra.mxu0 %vm54_vm0, %v3065_v32 }
0x2060   :  { %2440 = vmatpush3.msra.mxu0 %v2902_v51  ;;  %2447 = vmatprep.mubr.msk.f32.mxu0 %vm2622_vm1, %v2621_v8 }
0x2061   :  { %2441 = vmatprep.subr.mxu0 %v2621_v8 }
0x2062   :  { %2442 = vmatpush3.msra.mxu0 %v2914_v54 }
0x2063   :  { %2443 = vmatprep.subr.mxu0 %v2621_v8 }
0x2064   :  { %2444 = vmatpush3.msra.mxu0 %v2924_v56 }
0x2065   :  { %2445 = vmatprep.subr.mxu0 %v2621_v8 }
0x2066   :  { %2446 = vmatpush3.msra.mxu0 %v2934_v57 }
0x2067   :  { %2461 = vmatprep.subr.mxu0 %v1941_v63 }
0x211f   :  { %v1609_v33 = vpop.f32.mrf.mxu0 }
0x2120   :  { %v1613_v34 = vadd.f32 %v1609_v33, %v1116_v21 }
0x2121   :  { %v2427_v35 = vpop.f32.mrf.mxu0 }
0x2122   :  { %2589 = vtanh.f32 %v1613_v34  ;;  %v2113_v37 = vmul.f32 -1.442695, %v1613_v34 }
0x2124   :  { %2591 = vpow2.f32 %v2113_v37 }
0x212f   :  { %v2590_v36 = vpop.eup %2589 }
0x2130   :  { %1623 = vrot.lane.b32.xlu0 %v2590_v36, %s2623_s21 }
0x2131   :  { %v2592_v38 = vpop.eup %2591 }
0x2132   :  { %v1617_v39 = vadd.f32 1.0, %v2592_v38 }
0x2134   :  { %2593 = vrcp.f32 %v1617_v39 }
0x2141   :  { %v2594_v40 = vpop.eup %2593 }
0x2142   :  { %v1621_v43 = vmul.f32 %v2594_v40, %v1531_v28 }
0x21a2   :  { %v1624_v41 = vpop.permute.xlu0 %1623 }
0x21a3   :  { %v1626_v42 = vmul.f32 %v2594_v40, %v1624_v41  ;;  %v1131_v41 = vadd.f32 %v3037_v20, %v2966_v62 }
0x21a5   :  { %1628 = vrot.lane.b32.xlu1 %v1626_v42, %s2624_s4 }
0x2217   :  { %v1629_v44 = vpop.permute.xlu1 %1628 }
0x2218   :  { %v1631_v45 = vadd.f32 %v1629_v44, %v1621_v43 }
0x221a   :  { %2595 = vtanh.f32 %v1631_v45 }
0x2227   :  { %v2596_v47 = vpop.eup %2595 }
0x2228   :  { %1634 = vrot.lane.b32.xlu0 %v2596_v47, %s2623_s21 }
0x229a   :  { %v1635_v48 = vpop.permute.xlu0 %1634 }
0x229b   :  { %v1637_v18 = vmul.f32 %v2594_v40, %v1635_v48 }
0x229d   :  { %1639 = vrot.lane.b32.xlu1 %v1637_v18, %s2624_s4 }
0x230f   :  { %v1640_v52 = vpop.permute.xlu1 %1639 }
0x2310   :  { %2437 = vmatmul.mubr.msk.f32.vlgmr.msra.gmra.mxu1 %vm54_vm0, %v1640_v52 }
0x2311   :  { %2451 = vmatpush3.msra.mxu1 %v2902_v51  ;;  %2458 = vmatprep.mubr.msk.f32.mxu1 %vm2622_vm1, %v2621_v8 }
0x2312   :  { %2452 = vmatprep.subr.mxu1 %v2621_v8 }
0x2313   :  { %2453 = vmatpush3.msra.mxu1 %v2914_v54 }
0x2314   :  { %2454 = vmatprep.subr.mxu1 %v2621_v8 }
0x2315   :  { %2455 = vmatpush3.msra.mxu1 %v2924_v56 }
0x2316   :  { %2456 = vmatprep.subr.mxu1 %v2621_v8 }
0x2317   :  { %2457 = vmatpush3.msra.mxu1 %v2934_v57 }
0x23d0   :  { %v1709_v55 = vpop.f32.mrf.mxu1 }
0x23d1   :  { %v1713_v51 = vadd.f32 %v1709_v55, %v1121_v53 }
0x23d2   :  { %v2438_v16 = vpop.f32.mrf.mxu1 }
0x23d3   :  { %2597 = vtanh.f32 %v1713_v51  ;;  %v2115_v59 = vmul.f32 -1.442695, %v1713_v51 }
0x23d5   :  { %2599 = vpow2.f32 %v2115_v59 }
0x23e0   :  { %v2598_v58 = vpop.eup %2597 }
0x23e1   :  { %1723 = vrot.lane.b32.xlu0 %v2598_v58, %s2623_s21 }
0x23e2   :  { %v2600_v54 = vpop.eup %2599 }
0x23e3   :  { %v1717_v60 = vadd.f32 1.0, %v2600_v54 }
0x23e5   :  { %2601 = vrcp.f32 %v1717_v60 }
0x23f2   :  { %v2602_v56 = vpop.eup %2601 }
0x23f3   :  { %v1721_v57 = vmul.f32 %v2602_v56, %v1631_v45 }
0x2453   :  { %v1724_v6 = vpop.permute.xlu0 %1723 }
0x2454   :  { %v1726_v8 = vmul.f32 %v2602_v56, %v1724_v6 }
0x2456   :  { %1728 = vrot.lane.b32.xlu1 %v1726_v8, %s2624_s4 }
0x24c8   :  { %v1729_v61 = vpop.permute.xlu1 %1728 }
0x24c9   :  { %v3098_v49 = vadd.f32 %v1729_v61, %v1721_v57 }
0x24cb   :  { %2603 = vtanh.f32 %v3098_v49 }
0x24d8   :  { %v2604_v0 = vpop.eup %2603 }
0x24d9   :  { %1734 = vrot.lane.b32.xlu0 %v2604_v0, %s2623_s21 }
0x254b   :  { %v1735_v11 = vpop.permute.xlu0 %1734 }
0x254c   :  { %v1737_v1 = vmul.f32 %v2602_v56, %v1735_v11 }
0x254e   :  { %1739 = vrot.lane.b32.xlu1 %v1737_v1, %s2624_s4 }
0x25c0   :  { %v1740_v13 = vpop.permute.xlu1 %1739 }
0x25c1   :  { %2448 = vmatmul.mubr.msk.f32.vlgmr.msra.gmra.mxu0 %vm54_vm0, %v1740_v13 }
0x25c2   :  { %2462 = vmatpush3.msra.mxu0 %v1941_v63  ;;  %2469 = vmatprep.mubr.msk.f32.mxu0 %vm54_vm0, %v2974_v23  ;;  %v1126_v23 = vadd.f32 %v2966_v62, %v3039_v50 }
0x25c3   :  { %2463 = vmatprep.subr.mxu0 %v1940_v2 }
0x25c4   :  { %2464 = vmatpush3.msra.mxu0 %v1940_v2 }
0x25c5   :  { %2465 = vmatprep.subr.mxu0 %v1939_v3 }
0x25c6   :  { %2466 = vmatpush3.msra.mxu0 %v1939_v3 }
0x25c7   :  { %2467 = vmatprep.subr.mxu0 %v1938_v14 }
0x25c8   :  { %2468 = vmatpush3.msra.mxu0 %v1938_v14 }
0x25c9   :  { %2470 = vmatmul.mubr.msk.f32.vlgmr.msra.gmra.mxu0 %vm54_vm0, %v3019_v46  ;;  %v3131_v46 = vld [vmem:[%s3188_s9] ss:$0 sm:$0xff] }
0x25ca   :  { %2472 = vmatprep.mubr.msk.f32.mxu0 %vm54_vm0, %v3046_v4 }
0x25cd   :  { %2473 = vmatmul.mubr.msk.f32.gmra.mxu0 %vm54_vm0, %v3065_v32 }
0x25ce   :  { %2475 = vmatprep.mubr.msk.f32.mxu0 %vm54_vm0, %v1640_v52 }
0x25d1   :  { %2476 = vmatmul.mubr.msk.f32.gmra.mxu0 %vm54_vm0, %v1740_v13 }
0x2681   :  { %v1809_v5 = vpop.f32.mrf.mxu0 }
0x2682   :  { %v1813_v15 = vadd.f32 %v1809_v5, %v1126_v23 }
0x2683   :  { %v2449_v7 = vpop.f32.mrf.mxu0 }
0x2684   :  { %2605 = vtanh.f32 %v1813_v15  ;;  %v2117_v29 = vmul.f32 -1.442695, %v1813_v15 }
0x2686   :  { %2607 = vpow2.f32 %v2117_v29 }
0x2689   :  { %v2471_v4 = vpop.f32.mrf.mxu0 }
0x268a   :  { %v2026_v9 = vadd.f32 %v2471_v4, %v3131_v46 }
0x268b   :  { %v2020_v10 = vpop.f32.mrf.mxu0 }
0x268c   :  { %2060 = vst [vmem:[%s3189_s10 + $0x8] sm:$0xff] %v2026_v9  ;;  %v2021_v12 = vadd.f32 %v3131_v46, %v2020_v10 }
0x268d   :  { %v2474_v50 = vpop.f32.mrf.mxu0 }
0x268e   :  { %2059 = vst [vmem:[%s3189_s10] sm:$0xff] %v2021_v12  ;;  %v2036_v17 = vadd.f32 %v2474_v50, %v3131_v46 }
0x268f   :  { %v2030_v19 = vpop.f32.mrf.mxu0 }
0x2690   :  { %2062 = vst [vmem:[%s3189_s10 + $0x18] sm:$0xff] %v2036_v17  ;;  %v2031_v22 = vadd.f32 %v3131_v46, %v2030_v19 }
0x2691   :  { %v2606_v24 = vpop.eup %2605  ;;  %v2477_v25 = vpop.f32.mrf.mxu0 }
0x2692   :  { %2061 = vst [vmem:[%s3189_s10 + $0x10] sm:$0xff] %v2031_v22  ;;  %v2046_v26 = vadd.f32 %v2477_v25, %v3131_v46  ;;  %1823 = vrot.lane.b32.xlu0 %v2606_v24, %s2623_s21 }
0x2693   :  { %v2040_v27 = vpop.f32.mrf.mxu0  ;;  %v2608_v30 = vpop.eup %2607 }
0x2694   :  { %2064 = vst [vmem:[%s3189_s10 + $0x28] sm:$0xff] %v2046_v26  ;;  %v2041_v28 = vadd.f32 %v3131_v46, %v2040_v27  ;;  %v1817_v31 = vadd.f32 1.0, %v2608_v30 }
0x2696   :  { %2063 = vst [vmem:[%s3189_s10 + $0x20] sm:$0xff] %v2041_v28  ;;  %2609 = vrcp.f32 %v1817_v31 }
0x26a3   :  { %v2610_v32 = vpop.eup %2609 }
0x26a4   :  { %v1821_v34 = vmul.f32 %v2610_v32, %v3098_v49 }
0x2704   :  { %v1824_v21 = vpop.permute.xlu0 %1823 }
0x2705   :  { %v1826_v33 = vmul.f32 %v2610_v32, %v1824_v21 }
0x2707   :  { %1828 = vrot.lane.b32.xlu1 %v1826_v33, %s2624_s4 }
0x2779   :  { %v1829_v35 = vpop.permute.xlu1 %1828 }
0x277a   :  { %v1831_v36 = vadd.f32 %v1829_v35, %v1821_v34 }
0x277c   :  { %2611 = vtanh.f32 %v1831_v36 }
0x2789   :  { %v2612_v37 = vpop.eup %2611 }
0x278a   :  { %1834 = vrot.lane.b32.xlu0 %v2612_v37, %s2623_s21 }
0x27fc   :  { %v1835_v38 = vpop.permute.xlu0 %1834 }
0x27fd   :  { %v1837_v39 = vmul.f32 %v2610_v32, %v1835_v38 }
0x27ff   :  { %1839 = vrot.lane.b32.xlu1 %v1837_v39, %s2624_s4 }
0x2871   :  { %v1840_v40 = vpop.permute.xlu1 %1839 }
0x2872   :  { %2459 = vmatmul.mubr.msk.f32.vlgmr.msra.gmra.mxu1 %vm54_vm0, %v1840_v40  ;;  %2478 = vmatprep.mubr.msk.f32.mxu0 %vm54_vm0, %v1840_v40 }
0x2932   :  { %v1909_v42 = vpop.f32.mrf.mxu1 }
0x2933   :  { %v1913_v43 = vadd.f32 %v1909_v42, %v1131_v41 }
0x2934   :  { %v2460_v44 = vpop.f32.mrf.mxu1 }
0x2935   :  { %2613 = vtanh.f32 %v1913_v43  ;;  %v2119_v47 = vmul.f32 -1.442695, %v1913_v43 }
0x2937   :  { %2615 = vpow2.f32 %v2119_v47 }
0x2942   :  { %v2614_v45 = vpop.eup %2613 }
0x2943   :  { %1923 = vrot.lane.b32.xlu0 %v2614_v45, %s2623_s21 }
0x2944   :  { %v2616_v48 = vpop.eup %2615 }
0x2945   :  { %v1917_v18 = vadd.f32 1.0, %v2616_v48 }
0x2947   :  { %2617 = vrcp.f32 %v1917_v18 }
0x2954   :  { %v2618_v52 = vpop.eup %2617 }
0x2955   :  { %v1921_v51 = vmul.f32 %v2618_v52, %v1831_v36 }
0x29b5   :  { %v1924_v53 = vpop.permute.xlu0 %1923 }
0x29b6   :  { %v1926_v55 = vmul.f32 %v2618_v52, %v1924_v53 }
0x29b8   :  { %1928 = vrot.lane.b32.xlu1 %v1926_v55, %s2624_s4 }
0x2a2a   :  { %v1929_v16 = vpop.permute.xlu1 %1928 }
0x2a2b   :  { %v1931_v62 = vadd.f32 %v1929_v16, %v1921_v51 }
0x2a2d   :  { %2619 = vtanh.f32 %v1931_v62 }
0x2a3a   :  { %v2620_v20 = vpop.eup %2619 }
0x2a3b   :  { %1934 = vrot.lane.b32.xlu0 %v2620_v20, %s2623_s21 }
0x2aad   :  { %v1935_v58 = vpop.permute.xlu0 %1934 }
0x2aae   :  { %v1937_v59 = vmul.f32 %v2618_v52, %v1935_v58 }
0x2ab0   :  { %1950 = vrot.lane.b32.xlu1 %v1937_v59, %s2624_s4 }
0x2b22   :  { %v1951_v54 = vpop.permute.xlu1 %1950 }
0x2b23   :  { %2479 = vmatmul.mubr.msk.f32.gmra.mxu0 %vm54_vm0, %v1951_v54 }
0x2be3   :  { %v2480_v60 = vpop.f32.mrf.mxu0 }
0x2be4   :  { %v2056_v56 = vadd.f32 %v2480_v60, %v3131_v46 }
0x2be5   :  { %v2050_v6 = vpop.f32.mrf.mxu0 }
0x2be6   :  { %2066 = vst [vmem:[%s3189_s10 + $0x38] sm:$0xff] %v2056_v56  ;;  %v2051_v8 = vadd.f32 %v3131_v46, %v2050_v6 }
0x2be8   :  { %2065 = vst [vmem:[%s3189_s10 + $0x30] sm:$0xff] %v2051_v8 }

</bundles_post_ra>
